<compile_context>
chip_gen: v7x
topology: tpu7x:2x2x1
jax: 0.10.0
libtpu: 0.0.40
codegen_flags: <defaults>
</compile_context>

<pallas_src>
import functools

import jax
import jax.numpy as jnp
from jax import lax
from jax.experimental import pallas as pl
from jax.experimental.pallas import tpu as pltpu


# ---------------------------------------------------------------------------
# helpers (in-kernel)
# ---------------------------------------------------------------------------
def _softplus(x):
    # log1p-free softplus (only exp/log/abs/max -> guaranteed Mosaic lowering)
    return jnp.maximum(x, 0.0) + jnp.log(1.0 + jnp.exp(-jnp.abs(x)))


def _masked_layer_norm(h, gamma, beta, lane_mask, inv_d, eps=1e-5):
    # LayerNorm over the first d_real lanes only (padded lanes are exact zeros and
    # gamma/beta are zero-padded, so padded output lanes stay exactly 0).
    hm = h * lane_mask
    mu = jnp.sum(hm, axis=-1, keepdims=True) * inv_d
    xc = (h - mu) * lane_mask
    var = jnp.sum(xc * xc, axis=-1, keepdims=True) * inv_d
    return xc * lax.rsqrt(var + eps) * gamma + beta


# ---------------------------------------------------------------------------
# Fused kernel: INR -> RBF grams -> ridge solve (Gauss-Jordan) -> forecast
# ---------------------------------------------------------------------------
def _fused_kernel(rs_ref, rl_ref, bmat_ref, w0_ref, b0_ref,
                  wr_ref, br_ref, g_ref, be_ref, x_ref,
                  preds_ref, sigma_ref,
                  k_sc, x_sc,
                  *, num_layers, lookback, d_real, total_t):
    fp = bmat_ref.shape[1]          # padded fourier dim (multiple of 128)
    dp = b0_ref.shape[1]            # padded hidden dim  (multiple of 128)
    L = lookback

    # ---- scalars: softplus in-kernel (vector path on (1,1) tiles) ----
    sigma = _softplus(rs_ref[...])                     # (1, 1)
    lam = _softplus(rl_ref[...])                       # (1, 1)
    sigma_ref[...] = sigma
    inv_two_sig2 = 1.0 / (2.0 * sigma * sigma)         # (1, 1), broadcasts

    # ---- INR: Gaussian Fourier features + MLP (ReLU + masked LayerNorm) ----
    # coords = linspace(0, 1, T), generated in-kernel from an iota.
    coords = (lax.broadcasted_iota(jnp.int32, (total_t, fp), 0)
              .astype(jnp.float32) * (1.0 / (total_t - 1)))
    proj = coords * bmat_ref[...]                      # (T, Fp)  (in_feats == 1)
    feats = jnp.concatenate([jnp.sin(proj), jnp.cos(proj)], axis=-1)   # (T, 2*Fp)
    # first layer: single K=2*Fp matmul (padded cos lanes hit zero-padded weight rows)
    h = jnp.dot(feats, w0_ref[...], preferred_element_type=jnp.float32) + b0_ref[...]
    h = jnp.maximum(h, 0.0)

    lane_mask = (lax.broadcasted_iota(jnp.int32, (1, dp), 1)
                 < d_real).astype(jnp.float32)         # (1, Dp)
    inv_d = 1.0 / float(d_real)
    h = _masked_layer_norm(h, g_ref[0], be_ref[0], lane_mask, inv_d)
    for l in range(num_layers - 1):                    # small static count
        h = jnp.dot(h, wr_ref[l], preferred_element_type=jnp.float32) + br_ref[l]
        h = jnp.maximum(h, 0.0)
        h = _masked_layer_norm(h, g_ref[l + 1], be_ref[l + 1], lane_mask, inv_d)

    lb = h[:L]                                         # (L, Dp) lookback reprs

    # ---- RBF grams: one (T,L) matmul for lookback+horizon rows ----
    dn = (((1,), (1,)), ((), ()))                      # contract over last dims
    gram_all = lax.dot_general(h, lb, dn, preferred_element_type=jnp.float32)  # (T, L)
    gram = gram_all[:L]                                # (L, L)
    gram_c = gram_all[L:]                              # (H, L)

    sq_all = jnp.sum(h * h, axis=-1, keepdims=True)    # (T, 1) lane reduce (fast axis)
    lb_sq_col = sq_all[:L]                             # (L, 1)
    hz_sq_col = sq_all[L:]                             # (H, 1)

    ri_L = lax.broadcasted_iota(jnp.int32, (L, L), 0)
    ci_L = lax.broadcasted_iota(jnp.int32, (L, L), 1)
    eye_f = (ri_L == ci_L).astype(jnp.float32)         # (L, L)
    # (1, L) squared norms for the lane orientation (once per call, tiny).
    lb_sq_row = jnp.sum(gram * eye_f, axis=0, keepdims=True)   # (1, L)

    d2 = jnp.maximum(lb_sq_col + lb_sq_row - 2.0 * gram, 0.0)
    k_reg = jnp.exp(-d2 * inv_two_sig2) + lam * eye_f  # (L, L)  K + lambda*I

    d2c = jnp.maximum(hz_sq_col + lb_sq_row - 2.0 * gram_c, 0.0)
    k_cross = jnp.exp(-d2c * inv_two_sig2)             # (H, L)

    # ---- ridge solve: alpha = (K + lambda*I)^{-1} X, X = (L, BCp) ----
    # Gauss-Jordan without pivoting (SPD since lambda > 0 after softplus), one
    # factorization shared by all batches/channels (lane-dense wide RHS).
    # K and X live in VMEM scratch; pivot row fetched via dynamic ref slice; the
    # pivot-row rescale is folded into the rank-1 update (no dynamic stores).
    k_sc[...] = k_reg
    x_sc[...] = x_ref[...]

    ci_1L = lax.broadcasted_iota(jnp.int32, (1, L), 1)   # hoisted loop constants
    ri_L1 = lax.broadcasted_iota(jnp.int32, (L, 1), 0)

    def gj_step(k, carry):
        pr_K = k_sc[pl.ds(k, 1), :]                    # (1, L)   pivot row of K
        pr_X = x_sc[pl.ds(k, 1), :]                    # (1, BCp) pivot row of X
        onehot = (ci_1L == k).astype(jnp.float32)      # (1, L)
        piv = jnp.sum(pr_K * onehot, axis=1, keepdims=True)   # (1, 1) = K[k, k]
        inv_piv = 1.0 / piv
        pr_Kn = pr_K * inv_piv
        pr_Xn = pr_X * inv_piv
        Kmat = k_sc[...]                               # (L, L)
        # pivot column via lane-masked reduce (fast XLU axis, one pass)
        col = jnp.sum(Kmat * onehot, axis=1, keepdims=True)   # (L, 1) = K[:, k]
        # col_adj[k] = piv - 1 makes row k land exactly on pr_K / piv in one update
        col_adj = col - (ri_L1 == k).astype(jnp.float32)
        k_sc[...] = Kmat - col_adj * pr_Kn
        x_sc[...] = x_sc[...] - col_adj * pr_Xn
        return carry

    lax.fori_loop(0, L, gj_step, 0)
    # x_sc now holds alpha = (K + lambda*I)^{-1} x_flat        (L, BCp)

    # ---- forecast: one lane-dense matmul for all batches/channels ----
    preds_ref[...] = jnp.dot(k_cross, x_sc[...], preferred_element_type=jnp.float32)


# ---------------------------------------------------------------------------
# Parameter construction (deterministic, synthetic), with lane padding to 128
# ---------------------------------------------------------------------------
def _round_up(n, m):
    return ((n + m - 1) // m) * m


def init_params(key, *, n_fourier_feats, scales, layer_size, inr_layers, lane=128):
    n_scale_feats = n_fourier_feats // (2 * len(scales))
    keys = jax.random.split(key, 6)
    # Gaussian Fourier feature matrix B: (in_feats=1, n_scale_feats*len(scales))
    bcols = [jax.random.normal(keys[0], (1, n_scale_feats), jnp.float32) * s
             for s in scales]
    bmat = jnp.concatenate(bcols, axis=1)                          # (1, F/2)
    f2 = bmat.shape[1]

    f = n_fourier_feats
    lim0 = 1.0 / jnp.sqrt(jnp.float32(f))
    w0 = jax.random.uniform(keys[1], (f, layer_size), jnp.float32, -lim0, lim0)
    b0 = jax.random.uniform(keys[2], (1, layer_size), jnp.float32, -lim0, lim0)
    w0s, w0c = w0[:f2], w0[f2:]

    limh = 1.0 / jnp.sqrt(jnp.float32(layer_size))
    wr = jax.random.uniform(keys[3], (inr_layers - 1, layer_size, layer_size),
                            jnp.float32, -limh, limh)
    br = jax.random.uniform(keys[4], (inr_layers - 1, 1, layer_size),
                            jnp.float32, -limh, limh)
    gamma = jnp.ones((inr_layers, 1, layer_size), jnp.float32)
    beta = jnp.zeros((inr_layers, 1, layer_size), jnp.float32)

    # ---- zero-pad fourier and hidden dims to multiples of 128 lanes ----
    # (zero weights/bias/gamma/beta in the padded region + masked LayerNorm stats
    #  make the padded computation bit-identical to the unpadded math.)
    fp = _round_up(f2, lane)
    dp = _round_up(layer_size, lane)

    def pad(a, axis, target):
        amt = target - a.shape[axis]
        if amt <= 0:
            return a
        widths = [(0, 0)] * a.ndim
        widths[axis] = (0, amt)
        return jnp.pad(a, widths)

    bmat = pad(bmat, 1, fp)
    w0s = pad(pad(w0s, 0, fp), 1, dp)
    w0c = pad(pad(w0c, 0, fp), 1, dp)
    w0_full = jnp.concatenate([w0s, w0c], axis=0)      # (2*Fp, Dp): single first-layer W
    b0 = pad(b0, 1, dp)
    wr = pad(pad(wr, 1, dp), 2, dp)
    br = pad(br, 2, dp)
    gamma = pad(gamma, 2, dp)
    beta = pad(beta, 2, dp)

    return dict(bmat=bmat, w0=w0_full, b0=b0, wr=wr, br=br,
                gamma=gamma, beta=beta,
                raw_sigma=jnp.float32(1.0),    # kernel bandwidth (pre-softplus)
                raw_lambda=jnp.float32(0.0))   # ridge regularizer (pre-softplus)


# ---------------------------------------------------------------------------
# Full forward pass (single fused pallas_call; only layout plumbing outside)
# ---------------------------------------------------------------------------
def deeptime_forward(params, x, *, horizon, inr_layers, layer_size, lane=128):
    bsz, lookback, channels = x.shape
    t = lookback + horizon
    bc = bsz * channels
    bcp = _round_up(bc, lane)       # lane-dense RHS / output (unmasked stores)

    # (B, L, C) -> (L, B*C) zero-padded to (L, BCp): shared-K solve with wide RHS
    x_flat = jnp.transpose(x, (1, 0, 2)).reshape(lookback, bc).astype(jnp.float32)
    if bcp > bc:
        x_flat = jnp.pad(x_flat, ((0, 0), (0, bcp - bc)))
    raw_sig = params["raw_sigma"].reshape(1, 1).astype(jnp.float32)
    raw_lam = params["raw_lambda"].reshape(1, 1).astype(jnp.float32)

    kernel = functools.partial(
        _fused_kernel, num_layers=inr_layers, lookback=lookback,
        d_real=layer_size, total_t=t)

    vmem = pl.BlockSpec(memory_space=pltpu.MemorySpace.VMEM)
    preds_flat, sigma11 = pl.pallas_call(
        kernel,
        out_shape=(jax.ShapeDtypeStruct((horizon, bcp), jnp.float32),
                   jax.ShapeDtypeStruct((1, 1), jnp.float32)),
        in_specs=[vmem] * 10,
        out_specs=(vmem, vmem),
        scratch_shapes=[pltpu.VMEM((lookback, lookback), jnp.float32),  # K work matrix
                        pltpu.VMEM((lookback, bcp), jnp.float32)],      # RHS / alpha
    )(raw_sig, raw_lam, params["bmat"], params["w0"], params["b0"],
      params["wr"], params["br"], params["gamma"], params["beta"], x_flat)

    # (H, BCp) -> (B, H, C)
    preds = jnp.transpose(preds_flat[:, :bc].reshape(horizon, bsz, channels),
                          (1, 0, 2))
    kernel_sigma = sigma11[0, 0]
    return preds, kernel_sigma


if __name__ == "__main__":
    # Small-shape config consistent with the module's forward:
    batch, lookback, channels = 2, 16, 4
    horizon = 8
    layer_size = 32
    inr_layers = 3
    n_fourier_feats = 64
    scales = [0.01, 0.1, 1.0, 5.0]

    key = jax.random.PRNGKey(0)
    kp, kx = jax.random.split(key)
    params = init_params(kp, n_fourier_feats=n_fourier_feats, scales=scales,
                         layer_size=layer_size, inr_layers=inr_layers)
    x = jax.random.normal(kx, (batch, lookback, channels), jnp.float32)

    fwd = jax.jit(functools.partial(deeptime_forward, horizon=horizon,
                                    inr_layers=inr_layers, layer_size=layer_size))
    preds, kernel_sigma = fwd(params, x)
    jax.block_until_ready(preds)
    jax.block_until_ready(kernel_sigma)

    assert preds.shape == (batch, horizon, channels)
    assert bool(jnp.all(jnp.isfinite(preds)))
    assert bool(jnp.isfinite(kernel_sigma))
    print("KERNEL_OK")
</pallas_src>

<mosaic_0001>
module attributes {stable_mosaic.version = 11 : i64} {
  func.func @_fused_kernel(%arg0: memref<1x1xf32, #tpu.memory_space<vmem>>, %arg1: memref<1x1xf32, #tpu.memory_space<vmem>>, %arg2: memref<1x128xf32, #tpu.memory_space<vmem>>, %arg3: memref<256x128xf32, #tpu.memory_space<vmem>>, %arg4: memref<1x128xf32, #tpu.memory_space<vmem>>, %arg5: memref<2x128x128xf32, #tpu.memory_space<vmem>>, %arg6: memref<2x1x128xf32, #tpu.memory_space<vmem>>, %arg7: memref<3x1x128xf32, #tpu.memory_space<vmem>>, %arg8: memref<3x1x128xf32, #tpu.memory_space<vmem>>, %arg9: memref<16x128xf32, #tpu.memory_space<vmem>>, %arg10: memref<8x128xf32, #tpu.memory_space<vmem>>, %arg11: memref<1x1xf32, #tpu.memory_space<vmem>>, %arg12: memref<16x16xf32, #tpu.memory_space<vmem>>, %arg13: memref<16x128xf32, #tpu.memory_space<vmem>>) attributes {dimension_semantics = [], scalar_prefetch = 0 : i64, scratch_operands = 2 : i64, tpu.core_type = #tpu.core_type<tc>} {
    %c0 = arith.constant 0 : index
    %c0_0 = arith.constant 0 : index
    %0 = vector.load %arg0[%c0, %c0_0] : memref<1x1xf32, #tpu.memory_space<vmem>>, vector<1x1xf32>
    %cst = arith.constant 0.000000e+00 : f32
    %1 = vector.broadcast %cst : f32 to vector<1x1xf32>
    %2 = arith.maximumf %0, %1 : vector<1x1xf32>
    %3 = math.absf %0 : vector<1x1xf32>
    %cst_1 = arith.constant 0.000000e+00 : f32
    %4 = vector.broadcast %cst_1 : f32 to vector<1x1xf32>
    %5 = arith.subf %4, %3 : vector<1x1xf32>
    %6 = math.exp %5 : vector<1x1xf32>
    %cst_2 = arith.constant 1.000000e+00 : f32
    %7 = vector.broadcast %cst_2 : f32 to vector<1x1xf32>
    %8 = arith.addf %7, %6 : vector<1x1xf32>
    %9 = math.log %8 : vector<1x1xf32>
    %10 = arith.addf %2, %9 : vector<1x1xf32>
    %c0_3 = arith.constant 0 : index
    %c0_4 = arith.constant 0 : index
    %11 = vector.load %arg1[%c0_3, %c0_4] : memref<1x1xf32, #tpu.memory_space<vmem>>, vector<1x1xf32>
    %cst_5 = arith.constant 0.000000e+00 : f32
    %12 = vector.broadcast %cst_5 : f32 to vector<1x1xf32>
    %13 = arith.maximumf %11, %12 : vector<1x1xf32>
    %14 = math.absf %11 : vector<1x1xf32>
    %cst_6 = arith.constant 0.000000e+00 : f32
    %15 = vector.broadcast %cst_6 : f32 to vector<1x1xf32>
    %16 = arith.subf %15, %14 : vector<1x1xf32>
    %17 = math.exp %16 : vector<1x1xf32>
    %cst_7 = arith.constant 1.000000e+00 : f32
    %18 = vector.broadcast %cst_7 : f32 to vector<1x1xf32>
    %19 = arith.addf %18, %17 : vector<1x1xf32>
    %20 = math.log %19 : vector<1x1xf32>
    %21 = arith.addf %13, %20 : vector<1x1xf32>
    %c0_8 = arith.constant 0 : index
    %c0_9 = arith.constant 0 : index
    %22 = vector.load %arg11[%c0_8, %c0_9] : memref<1x1xf32, #tpu.memory_space<vmem>>, vector<1x1xf32>
    tpu.vector_store %arg11[%c0_8, %c0_9], %10 {strides = array<i32>} : memref<1x1xf32, #tpu.memory_space<vmem>>, vector<1x1xf32>,
    %cst_10 = arith.constant 2.000000e+00 : f32
    %23 = vector.broadcast %cst_10 : f32 to vector<1x1xf32>
    %24 = arith.mulf %23, %10 : vector<1x1xf32>
    %25 = arith.mulf %24, %10 : vector<1x1xf32>
    %cst_11 = arith.constant 1.000000e+00 : f32
    %26 = vector.broadcast %cst_11 : f32 to vector<1x1xf32>
    %27 = arith.divf %26, %25 : vector<1x1xf32>
    %28 = tpu.iota {dimensions = array<i32: 0>} : vector<24x128xi32>
    %29 = arith.sitofp %28 : vector<24x128xi32> to vector<24x128xf32>
    %cst_12 = arith.constant 0.0434782617 : f32
    %30 = vector.broadcast %cst_12 : f32 to vector<24x128xf32>
    %31 = arith.mulf %29, %30 : vector<24x128xf32>
    %c0_13 = arith.constant 0 : index
    %c0_14 = arith.constant 0 : index
    %32 = vector.load %arg2[%c0_13, %c0_14] : memref<1x128xf32, #tpu.memory_space<vmem>>, vector<1x128xf32>
    %33 = vector.broadcast %32 : vector<1x128xf32> to vector<24x128xf32>
    %34 = arith.mulf %31, %33 : vector<24x128xf32>
    %35 = math.sin %34 : vector<24x128xf32>
    %36 = math.cos %34 : vector<24x128xf32>
    %37 = tpu.concatenate %35, %36 in 1 : vector<24x128xf32>, vector<24x128xf32> -> vector<24x256xf32>
    %c0_15 = arith.constant 0 : index
    %c0_16 = arith.constant 0 : index
    %38 = vector.load %arg3[%c0_15, %c0_16] : memref<256x128xf32, #tpu.memory_space<vmem>>, vector<256x128xf32>
    %cst_17 = arith.constant dense<0.000000e+00> : vector<24x128xf32>
    %39 = tpu.matmul %37, %38, %cst_17 {dimension_numbers = #tpu.dot_dimension_numbers<[1], [0], [0], [1], [0, 0, 1, 1], [], []>} : vector<24x256xf32>, vector<256x128xf32>, vector<24x128xf32> -> vector<24x128xf32>
    %c0_18 = arith.constant 0 : index
    %c0_19 = arith.constant 0 : index
    %40 = vector.load %arg4[%c0_18, %c0_19] : memref<1x128xf32, #tpu.memory_space<vmem>>, vector<1x128xf32>
    %41 = vector.broadcast %40 : vector<1x128xf32> to vector<24x128xf32>
    %42 = arith.addf %39, %41 : vector<24x128xf32>
    %cst_20 = arith.constant 0.000000e+00 : f32
    %43 = vector.broadcast %cst_20 : f32 to vector<24x128xf32>
    %44 = arith.maximumf %42, %43 : vector<24x128xf32>
    %45 = tpu.iota {dimensions = array<i32: 1>} : vector<1x128xi32>
    %c32_i32 = arith.constant 32 : i32
    %46 = vector.broadcast %c32_i32 : i32 to vector<1x128xi32>
    %47 = arith.cmpi slt, %45, %46 : vector<1x128xi32>
    %48 = arith.extui %47 : vector<1x128xi1> to vector<1x128xi32>
    %49 = arith.sitofp %48 : vector<1x128xi32> to vector<1x128xf32>
    %c0_21 = arith.constant 0 : index
    %c0_22 = arith.constant 0 : index
    %c0_23 = arith.constant 0 : index
    %50 = vector.load %arg7[%c0_21, %c0_22, %c0_23] : memref<3x1x128xf32, #tpu.memory_space<vmem>>, vector<1x1x128xf32>
    %51 = vector.shape_cast %50 : vector<1x1x128xf32> to vector<1x128xf32>
    %c0_24 = arith.constant 0 : index
    %c0_25 = arith.constant 0 : index
    %c0_26 = arith.constant 0 : index
    %52 = vector.load %arg8[%c0_24, %c0_25, %c0_26] : memref<3x1x128xf32, #tpu.memory_space<vmem>>, vector<1x1x128xf32>
    %53 = vector.shape_cast %52 : vector<1x1x128xf32> to vector<1x128xf32>
    %54 = vector.broadcast %49 : vector<1x128xf32> to vector<24x128xf32>
    %55 = arith.mulf %44, %54 : vector<24x128xf32>
    %cst_27 = arith.constant dense<0.000000e+00> : vector<24xf32>
    %56 = vector.multi_reduction <add>, %55, %cst_27 [1] : vector<24x128xf32> to vector<24xf32>
    %57 = vector.shape_cast %56 : vector<24xf32> to vector<24x1xf32>
    %cst_28 = arith.constant 3.125000e-02 : f32
    %58 = vector.broadcast %cst_28 : f32 to vector<24x1xf32>
    %59 = arith.mulf %57, %58 : vector<24x1xf32>
    %60 = vector.broadcast %59 : vector<24x1xf32> to vector<24x128xf32>
    %61 = arith.subf %44, %60 : vector<24x128xf32>
    %62 = vector.broadcast %49 : vector<1x128xf32> to vector<24x128xf32>
    %63 = arith.mulf %61, %62 : vector<24x128xf32>
    %64 = arith.mulf %63, %63 : vector<24x128xf32>
    %cst_29 = arith.constant dense<0.000000e+00> : vector<24xf32>
    %65 = vector.multi_reduction <add>, %64, %cst_29 [1] : vector<24x128xf32> to vector<24xf32>
    %66 = vector.shape_cast %65 : vector<24xf32> to vector<24x1xf32>
    %cst_30 = arith.constant 3.125000e-02 : f32
    %67 = vector.broadcast %cst_30 : f32 to vector<24x1xf32>
    %68 = arith.mulf %66, %67 : vector<24x1xf32>
    %cst_31 = arith.constant 9.99999974E-6 : f32
    %69 = vector.broadcast %cst_31 : f32 to vector<24x1xf32>
    %70 = arith.addf %68, %69 : vector<24x1xf32>
    %71 = math.rsqrt %70 : vector<24x1xf32>
    %72 = vector.broadcast %71 : vector<24x1xf32> to vector<24x128xf32>
    %73 = arith.mulf %63, %72 : vector<24x128xf32>
    %74 = vector.broadcast %51 : vector<1x128xf32> to vector<24x128xf32>
    %75 = arith.mulf %73, %74 : vector<24x128xf32>
    %76 = vector.broadcast %53 : vector<1x128xf32> to vector<24x128xf32>
    %77 = arith.addf %75, %76 : vector<24x128xf32>
    %c0_32 = arith.constant 0 : index
    %c0_33 = arith.constant 0 : index
    %c0_34 = arith.constant 0 : index
    %78 = vector.load %arg5[%c0_32, %c0_33, %c0_34] : memref<2x128x128xf32, #tpu.memory_space<vmem>>, vector<1x128x128xf32>
    %79 = vector.shape_cast %78 : vector<1x128x128xf32> to vector<128x128xf32>
    %cst_35 = arith.constant dense<0.000000e+00> : vector<24x128xf32>
    %80 = tpu.matmul %77, %79, %cst_35 {dimension_numbers = #tpu.dot_dimension_numbers<[1], [0], [0], [1], [0, 0, 1, 1], [], []>} : vector<24x128xf32>, vector<128x128xf32>, vector<24x128xf32> -> vector<24x128xf32>
    %c0_36 = arith.constant 0 : index
    %c0_37 = arith.constant 0 : index
    %c0_38 = arith.constant 0 : index
    %81 = vector.load %arg6[%c0_36, %c0_37, %c0_38] : memref<2x1x128xf32, #tpu.memory_space<vmem>>, vector<1x1x128xf32>
    %82 = vector.shape_cast %81 : vector<1x1x128xf32> to vector<1x128xf32>
    %83 = vector.broadcast %82 : vector<1x128xf32> to vector<24x128xf32>
    %84 = arith.addf %80, %83 : vector<24x128xf32>
    %cst_39 = arith.constant 0.000000e+00 : f32
    %85 = vector.broadcast %cst_39 : f32 to vector<24x128xf32>
    %86 = arith.maximumf %84, %85 : vector<24x128xf32>
    %c1 = arith.constant 1 : index
    %c0_40 = arith.constant 0 : index
    %c0_41 = arith.constant 0 : index
    %87 = vector.load %arg7[%c1, %c0_40, %c0_41] : memref<3x1x128xf32, #tpu.memory_space<vmem>>, vector<1x1x128xf32>
    %88 = vector.shape_cast %87 : vector<1x1x128xf32> to vector<1x128xf32>
    %c1_42 = arith.constant 1 : index
    %c0_43 = arith.constant 0 : index
    %c0_44 = arith.constant 0 : index
    %89 = vector.load %arg8[%c1_42, %c0_43, %c0_44] : memref<3x1x128xf32, #tpu.memory_space<vmem>>, vector<1x1x128xf32>
    %90 = vector.shape_cast %89 : vector<1x1x128xf32> to vector<1x128xf32>
    %91 = vector.broadcast %49 : vector<1x128xf32> to vector<24x128xf32>
    %92 = arith.mulf %86, %91 : vector<24x128xf32>
    %cst_45 = arith.constant dense<0.000000e+00> : vector<24xf32>
    %93 = vector.multi_reduction <add>, %92, %cst_45 [1] : vector<24x128xf32> to vector<24xf32>
    %94 = vector.shape_cast %93 : vector<24xf32> to vector<24x1xf32>
    %cst_46 = arith.constant 3.125000e-02 : f32
    %95 = vector.broadcast %cst_46 : f32 to vector<24x1xf32>
    %96 = arith.mulf %94, %95 : vector<24x1xf32>
    %97 = vector.broadcast %96 : vector<24x1xf32> to vector<24x128xf32>
    %98 = arith.subf %86, %97 : vector<24x128xf32>
    %99 = vector.broadcast %49 : vector<1x128xf32> to vector<24x128xf32>
    %100 = arith.mulf %98, %99 : vector<24x128xf32>
    %101 = arith.mulf %100, %100 : vector<24x128xf32>
    %cst_47 = arith.constant dense<0.000000e+00> : vector<24xf32>
    %102 = vector.multi_reduction <add>, %101, %cst_47 [1] : vector<24x128xf32> to vector<24xf32>
    %103 = vector.shape_cast %102 : vector<24xf32> to vector<24x1xf32>
    %cst_48 = arith.constant 3.125000e-02 : f32
    %104 = vector.broadcast %cst_48 : f32 to vector<24x1xf32>
    %105 = arith.mulf %103, %104 : vector<24x1xf32>
    %cst_49 = arith.constant 9.99999974E-6 : f32
    %106 = vector.broadcast %cst_49 : f32 to vector<24x1xf32>
    %107 = arith.addf %105, %106 : vector<24x1xf32>
    %108 = math.rsqrt %107 : vector<24x1xf32>
    %109 = vector.broadcast %108 : vector<24x1xf32> to vector<24x128xf32>
    %110 = arith.mulf %100, %109 : vector<24x128xf32>
    %111 = vector.broadcast %88 : vector<1x128xf32> to vector<24x128xf32>
    %112 = arith.mulf %110, %111 : vector<24x128xf32>
    %113 = vector.broadcast %90 : vector<1x128xf32> to vector<24x128xf32>
    %114 = arith.addf %112, %113 : vector<24x128xf32>
    %c1_50 = arith.constant 1 : index
    %c0_51 = arith.constant 0 : index
    %c0_52 = arith.constant 0 : index
    %115 = vector.load %arg5[%c1_50, %c0_51, %c0_52] : memref<2x128x128xf32, #tpu.memory_space<vmem>>, vector<1x128x128xf32>
    %116 = vector.shape_cast %115 : vector<1x128x128xf32> to vector<128x128xf32>
    %cst_53 = arith.constant dense<0.000000e+00> : vector<24x128xf32>
    %117 = tpu.matmul %114, %116, %cst_53 {dimension_numbers = #tpu.dot_dimension_numbers<[1], [0], [0], [1], [0, 0, 1, 1], [], []>} : vector<24x128xf32>, vector<128x128xf32>, vector<24x128xf32> -> vector<24x128xf32>
    %c1_54 = arith.constant 1 : index
    %c0_55 = arith.constant 0 : index
    %c0_56 = arith.constant 0 : index
    %118 = vector.load %arg6[%c1_54, %c0_55, %c0_56] : memref<2x1x128xf32, #tpu.memory_space<vmem>>, vector<1x1x128xf32>
    %119 = vector.shape_cast %118 : vector<1x1x128xf32> to vector<1x128xf32>
    %120 = vector.broadcast %119 : vector<1x128xf32> to vector<24x128xf32>
    %121 = arith.addf %117, %120 : vector<24x128xf32>
    %cst_57 = arith.constant 0.000000e+00 : f32
    %122 = vector.broadcast %cst_57 : f32 to vector<24x128xf32>
    %123 = arith.maximumf %121, %122 : vector<24x128xf32>
    %c2 = arith.constant 2 : index
    %c0_58 = arith.constant 0 : index
    %c0_59 = arith.constant 0 : index
    %124 = vector.load %arg7[%c2, %c0_58, %c0_59] : memref<3x1x128xf32, #tpu.memory_space<vmem>>, vector<1x1x128xf32>
    %125 = vector.shape_cast %124 : vector<1x1x128xf32> to vector<1x128xf32>
    %c2_60 = arith.constant 2 : index
    %c0_61 = arith.constant 0 : index
    %c0_62 = arith.constant 0 : index
    %126 = vector.load %arg8[%c2_60, %c0_61, %c0_62] : memref<3x1x128xf32, #tpu.memory_space<vmem>>, vector<1x1x128xf32>
    %127 = vector.shape_cast %126 : vector<1x1x128xf32> to vector<1x128xf32>
    %128 = vector.broadcast %49 : vector<1x128xf32> to vector<24x128xf32>
    %129 = arith.mulf %123, %128 : vector<24x128xf32>
    %cst_63 = arith.constant dense<0.000000e+00> : vector<24xf32>
    %130 = vector.multi_reduction <add>, %129, %cst_63 [1] : vector<24x128xf32> to vector<24xf32>
    %131 = vector.shape_cast %130 : vector<24xf32> to vector<24x1xf32>
    %cst_64 = arith.constant 3.125000e-02 : f32
    %132 = vector.broadcast %cst_64 : f32 to vector<24x1xf32>
    %133 = arith.mulf %131, %132 : vector<24x1xf32>
    %134 = vector.broadcast %133 : vector<24x1xf32> to vector<24x128xf32>
    %135 = arith.subf %123, %134 : vector<24x128xf32>
    %136 = vector.broadcast %49 : vector<1x128xf32> to vector<24x128xf32>
    %137 = arith.mulf %135, %136 : vector<24x128xf32>
    %138 = arith.mulf %137, %137 : vector<24x128xf32>
    %cst_65 = arith.constant dense<0.000000e+00> : vector<24xf32>
    %139 = vector.multi_reduction <add>, %138, %cst_65 [1] : vector<24x128xf32> to vector<24xf32>
    %140 = vector.shape_cast %139 : vector<24xf32> to vector<24x1xf32>
    %cst_66 = arith.constant 3.125000e-02 : f32
    %141 = vector.broadcast %cst_66 : f32 to vector<24x1xf32>
    %142 = arith.mulf %140, %141 : vector<24x1xf32>
    %cst_67 = arith.constant 9.99999974E-6 : f32
    %143 = vector.broadcast %cst_67 : f32 to vector<24x1xf32>
    %144 = arith.addf %142, %143 : vector<24x1xf32>
    %145 = math.rsqrt %144 : vector<24x1xf32>
    %146 = vector.broadcast %145 : vector<24x1xf32> to vector<24x128xf32>
    %147 = arith.mulf %137, %146 : vector<24x128xf32>
    %148 = vector.broadcast %125 : vector<1x128xf32> to vector<24x128xf32>
    %149 = arith.mulf %147, %148 : vector<24x128xf32>
    %150 = vector.broadcast %127 : vector<1x128xf32> to vector<24x128xf32>
    %151 = arith.addf %149, %150 : vector<24x128xf32>
    %152 = vector.extract_strided_slice %151 {offsets = [0, 0], sizes = [16, 128], strides = [1, 1]} : vector<24x128xf32> to vector<16x128xf32>
    %cst_68 = arith.constant dense<0.000000e+00> : vector<24x16xf32>
    %153 = tpu.matmul %151, %152, %cst_68 {dimension_numbers = #tpu.dot_dimension_numbers<[1], [1], [0], [0], [0, 0, 1, 0], [], []>} : vector<24x128xf32>, vector<16x128xf32>, vector<24x16xf32> -> vector<24x16xf32>
    %154 = vector.extract_strided_slice %153 {offsets = [0, 0], sizes = [16, 16], strides = [1, 1]} : vector<24x16xf32> to vector<16x16xf32>
    %155 = vector.extract_strided_slice %153 {offsets = [16, 0], sizes = [8, 16], strides = [1, 1]} : vector<24x16xf32> to vector<8x16xf32>
    %156 = arith.mulf %151, %151 : vector<24x128xf32>
    %cst_69 = arith.constant dense<0.000000e+00> : vector<24xf32>
    %157 = vector.multi_reduction <add>, %156, %cst_69 [1] : vector<24x128xf32> to vector<24xf32>
    %158 = vector.shape_cast %157 : vector<24xf32> to vector<24x1xf32>
    %159 = vector.extract_strided_slice %158 {offsets = [0, 0], sizes = [16, 1], strides = [1, 1]} : vector<24x1xf32> to vector<16x1xf32>
    %160 = vector.extract_strided_slice %158 {offsets = [16, 0], sizes = [8, 1], strides = [1, 1]} : vector<24x1xf32> to vector<8x1xf32>
    %161 = tpu.iota {dimensions = array<i32: 0>} : vector<16x16xi32>
    %162 = tpu.iota {dimensions = array<i32: 1>} : vector<16x16xi32>
    %163 = arith.cmpi eq, %161, %162 : vector<16x16xi32>
    %164 = arith.extui %163 : vector<16x16xi1> to vector<16x16xi32>
    %165 = arith.sitofp %164 : vector<16x16xi32> to vector<16x16xf32>
    %166 = arith.mulf %154, %165 : vector<16x16xf32>
    %cst_70 = arith.constant dense<0.000000e+00> : vector<16xf32>
    %167 = vector.multi_reduction <add>, %166, %cst_70 [0] : vector<16x16xf32> to vector<16xf32>
    %168 = vector.shape_cast %167 : vector<16xf32> to vector<1x16xf32>
    %169 = vector.broadcast %159 : vector<16x1xf32> to vector<16x16xf32>
    %170 = vector.broadcast %168 : vector<1x16xf32> to vector<16x16xf32>
    %171 = arith.addf %169, %170 : vector<16x16xf32>
    %cst_71 = arith.constant 2.000000e+00 : f32
    %172 = vector.broadcast %cst_71 : f32 to vector<16x16xf32>
    %173 = arith.mulf %172, %154 : vector<16x16xf32>
    %174 = arith.subf %171, %173 : vector<16x16xf32>
    %cst_72 = arith.constant 0.000000e+00 : f32
    %175 = vector.broadcast %cst_72 : f32 to vector<16x16xf32>
    %176 = arith.maximumf %174, %175 : vector<16x16xf32>
    %cst_73 = arith.constant 0.000000e+00 : f32
    %177 = vector.broadcast %cst_73 : f32 to vector<16x16xf32>
    %178 = arith.subf %177, %176 : vector<16x16xf32>
    %179 = vector.broadcast %27 : vector<1x1xf32> to vector<16x16xf32>
    %180 = arith.mulf %178, %179 : vector<16x16xf32>
    %181 = math.exp %180 : vector<16x16xf32>
    %182 = vector.broadcast %21 : vector<1x1xf32> to vector<16x16xf32>
    %183 = arith.mulf %182, %165 : vector<16x16xf32>
    %184 = arith.addf %181, %183 : vector<16x16xf32>
    %185 = vector.broadcast %160 : vector<8x1xf32> to vector<8x16xf32>
    %186 = vector.broadcast %168 : vector<1x16xf32> to vector<8x16xf32>
    %187 = arith.addf %185, %186 : vector<8x16xf32>
    %cst_74 = arith.constant 2.000000e+00 : f32
    %188 = vector.broadcast %cst_74 : f32 to vector<8x16xf32>
    %189 = arith.mulf %188, %155 : vector<8x16xf32>
    %190 = arith.subf %187, %189 : vector<8x16xf32>
    %cst_75 = arith.constant 0.000000e+00 : f32
    %191 = vector.broadcast %cst_75 : f32 to vector<8x16xf32>
    %192 = arith.maximumf %190, %191 : vector<8x16xf32>
    %cst_76 = arith.constant 0.000000e+00 : f32
    %193 = vector.broadcast %cst_76 : f32 to vector<8x16xf32>
    %194 = arith.subf %193, %192 : vector<8x16xf32>
    %195 = vector.broadcast %27 : vector<1x1xf32> to vector<8x16xf32>
    %196 = arith.mulf %194, %195 : vector<8x16xf32>
    %197 = math.exp %196 : vector<8x16xf32>
    %c0_77 = arith.constant 0 : index
    %c0_78 = arith.constant 0 : index
    %198 = vector.load %arg12[%c0_77, %c0_78] : memref<16x16xf32, #tpu.memory_space<vmem>>, vector<16x16xf32>
    tpu.vector_store %arg12[%c0_77, %c0_78], %184 {strides = array<i32>} : memref<16x16xf32, #tpu.memory_space<vmem>>, vector<16x16xf32>,
    %c0_79 = arith.constant 0 : index
    %c0_80 = arith.constant 0 : index
    %199 = vector.load %arg9[%c0_79, %c0_80] : memref<16x128xf32, #tpu.memory_space<vmem>>, vector<16x128xf32>
    %c0_81 = arith.constant 0 : index
    %c0_82 = arith.constant 0 : index
    %200 = vector.load %arg13[%c0_81, %c0_82] : memref<16x128xf32, #tpu.memory_space<vmem>>, vector<16x128xf32>
    tpu.vector_store %arg13[%c0_81, %c0_82], %199 {strides = array<i32>} : memref<16x128xf32, #tpu.memory_space<vmem>>, vector<16x128xf32>,
    %201 = tpu.iota {dimensions = array<i32: 1>} : vector<1x16xi32>
    %202 = tpu.iota {dimensions = array<i32: 0>} : vector<16x1xi32>
    %c0_i32 = arith.constant 0 : i32
    %c16_i32 = arith.constant 16 : i32
    %203 = arith.addi %c0_i32, %c16_i32 : i32
    %c1_i32 = arith.constant 1 : i32
    scf.for %arg14 = %c0_i32 to %203 step %c1_i32  : i32 {
      %207 = arith.index_cast %arg14 : i32 to index
      %c0_89 = arith.constant 0 : index
      %208 = vector.load %arg12[%207, %c0_89] : memref<16x16xf32, #tpu.memory_space<vmem>>, vector<1x16xf32>
      %209 = arith.index_cast %arg14 : i32 to index
      %c0_90 = arith.constant 0 : index
      %210 = vector.load %arg13[%209, %c0_90] : memref<16x128xf32, #tpu.memory_space<vmem>>, vector<1x128xf32>
      %211 = vector.broadcast %arg14 : i32 to vector<1x16xi32>
      %212 = arith.cmpi eq, %201, %211 : vector<1x16xi32>
      %213 = arith.extui %212 : vector<1x16xi1> to vector<1x16xi32>
      %214 = arith.sitofp %213 : vector<1x16xi32> to vector<1x16xf32>
      %215 = arith.mulf %208, %214 : vector<1x16xf32>
      %cst_91 = arith.constant dense<0.000000e+00> : vector<1xf32>
      %216 = vector.multi_reduction <add>, %215, %cst_91 [1] : vector<1x16xf32> to vector<1xf32>
      %217 = vector.shape_cast %216 : vector<1xf32> to vector<1x1xf32>
      %cst_92 = arith.constant 1.000000e+00 : f32
      %218 = vector.broadcast %cst_92 : f32 to vector<1x1xf32>
      %219 = arith.divf %218, %217 : vector<1x1xf32>
      %220 = vector.broadcast %219 : vector<1x1xf32> to vector<1x16xf32>
      %221 = arith.mulf %208, %220 : vector<1x16xf32>
      %222 = vector.broadcast %219 : vector<1x1xf32> to vector<1x128xf32>
      %223 = arith.mulf %210, %222 : vector<1x128xf32>
      %c0_93 = arith.constant 0 : index
      %c0_94 = arith.constant 0 : index
      %224 = vector.load %arg12[%c0_93, %c0_94] : memref<16x16xf32, #tpu.memory_space<vmem>>, vector<16x16xf32>
      %225 = vector.broadcast %214 : vector<1x16xf32> to vector<16x16xf32>
      %226 = arith.mulf %224, %225 : vector<16x16xf32>
      %cst_95 = arith.constant dense<0.000000e+00> : vector<16xf32>
      %227 = vector.multi_reduction <add>, %226, %cst_95 [1] : vector<16x16xf32> to vector<16xf32>
      %228 = vector.shape_cast %227 : vector<16xf32> to vector<16x1xf32>
      %229 = vector.broadcast %arg14 : i32 to vector<16x1xi32>
      %230 = arith.cmpi eq, %202, %229 : vector<16x1xi32>
      %231 = arith.extui %230 : vector<16x1xi1> to vector<16x1xi32>
      %232 = arith.sitofp %231 : vector<16x1xi32> to vector<16x1xf32>
      %233 = arith.subf %228, %232 : vector<16x1xf32>
      %234 = vector.broadcast %233 : vector<16x1xf32> to vector<16x16xf32>
      %235 = vector.broadcast %221 : vector<1x16xf32> to vector<16x16xf32>
      %236 = arith.mulf %234, %235 : vector<16x16xf32>
      %237 = arith.subf %224, %236 : vector<16x16xf32>
      %c0_96 = arith.constant 0 : index
      %c0_97 = arith.constant 0 : index
      %238 = vector.load %arg12[%c0_96, %c0_97] : memref<16x16xf32, #tpu.memory_space<vmem>>, vector<16x16xf32>
      tpu.vector_store %arg12[%c0_96, %c0_97], %237 {strides = array<i32>} : memref<16x16xf32, #tpu.memory_space<vmem>>, vector<16x16xf32>,
      %c0_98 = arith.constant 0 : index
      %c0_99 = arith.constant 0 : index
      %239 = vector.load %arg13[%c0_98, %c0_99] : memref<16x128xf32, #tpu.memory_space<vmem>>, vector<16x128xf32>
      %240 = vector.broadcast %233 : vector<16x1xf32> to vector<16x128xf32>
      %241 = vector.broadcast %223 : vector<1x128xf32> to vector<16x128xf32>
      %242 = arith.mulf %240, %241 : vector<16x128xf32>
      %243 = arith.subf %239, %242 : vector<16x128xf32>
      %c0_100 = arith.constant 0 : index
      %c0_101 = arith.constant 0 : index
      %244 = vector.load %arg13[%c0_100, %c0_101] : memref<16x128xf32, #tpu.memory_space<vmem>>, vector<16x128xf32>
      tpu.vector_store %arg13[%c0_100, %c0_101], %243 {strides = array<i32>} : memref<16x128xf32, #tpu.memory_space<vmem>>, vector<16x128xf32>,
    }
    %c16_i32_83 = arith.constant 16 : i32
    %c0_84 = arith.constant 0 : index
    %c0_85 = arith.constant 0 : index
    %204 = vector.load %arg13[%c0_84, %c0_85] : memref<16x128xf32, #tpu.memory_space<vmem>>, vector<16x128xf32>
    %cst_86 = arith.constant dense<0.000000e+00> : vector<8x128xf32>
    %205 = tpu.matmul %197, %204, %cst_86 {dimension_numbers = #tpu.dot_dimension_numbers<[1], [0], [0], [1], [0, 0, 1, 1], [], []>} : vector<8x16xf32>, vector<16x128xf32>, vector<8x128xf32> -> vector<8x128xf32>
    %c0_87 = arith.constant 0 : index
    %c0_88 = arith.constant 0 : index
    %206 = vector.load %arg10[%c0_87, %c0_88] : memref<8x128xf32, #tpu.memory_space<vmem>>, vector<8x128xf32>
    tpu.vector_store %arg10[%c0_87, %c0_88], %205 {strides = array<i32>} : memref<8x128xf32, #tpu.memory_space<vmem>>, vector<8x128xf32>,
    return
  }
}

</mosaic_0001>

<bundles_post_ra>
// kernel: deeptime_forward.1
= control target key start
LH: loop header
LB: loop body
LE: loop exit
PB: predicated region body
PF: predicated region fallthrough
CT: control target
= control target key end

     0   :  { %s2522_s0 = inlined_call_operand.<no memory space> [shape: f32[1,1], index: 0, kind: input, shape index: {}]   ;;  %s2523_s2 = inlined_call_operand.vmem [shape: f32[1,128], index: 2, kind: input, shape index: {}]   ;;  %s2524_s3 = inlined_call_operand.hbm [shape: f32[256,128], index: 3, kind: input, shape index: {}]   ;;  %s2525_s4 = inlined_call_operand.vmem [shape: f32[1,128], index: 4, kind: input, shape index: {}]   ;;  %s2526_s5 = inlined_call_operand.hbm [shape: f32[2,128,128], index: 5, kind: input, shape index: {}]   ;;  %s2527_s6 = inlined_call_operand.vmem [shape: f32[2,1,128], index: 6, kind: input, shape index: {}]   ;;  %s2528_s7 = inlined_call_operand.vmem [shape: f32[3,1,128], index: 7, kind: input, shape index: {}]   ;;  %s2529_s8 = inlined_call_operand.vmem [shape: f32[3,1,128], index: 8, kind: input, shape index: {}]   ;;  %s2530_s9 = inlined_call_operand.vmem [shape: f32[16,128], index: 9, kind: input, shape index: {}]   ;;  %s2531_s10 = inlined_call_operand.vmem [shape: f32[8,128], index: 10, kind: output, shape index: {0}]   ;;  %s2532_s11 = inlined_call_operand.hbm [shape: f32[1,1], index: 11, kind: output, shape index: {1}]   ;;  %s2533_s1 = inlined_call_operand.<no memory space> [shape: f32[1,1], index: 1, kind: input, shape index: {}]  }
   0x1   :  { %v17_v0 = vstv %s2522_s0  ;;  %v19_v1 = vstv %s2533_s1 }
   0x2   :  { %18 = vst [vmem:[#allocation4] sm:$0x1] %v17_v0  ;;  %20 = vst [vmem:[#allocation5] sm:$0x1] %v19_v1 }
   0x3   :  { %21 = vsyncpa [#allocation7], 0 }
   0x4   :  { %22 = vsyncpa [#allocation10], 0 }
   0x5   :  { %23 = vsyncpa [#allocation8], 0  ;;  %s2071_s21 = smov [#allocation6]   ;;  %s1991_s25 = scalar_lea.hbm %s2524_s3, 4096 }
   0x6   :  { %s35_s22 = sshll.u32 %s2071_s21, 4  ;;  %p1992_p0 = scmp.ne.s32.totalorder %s2524_s3, %s1991_s25  ;;  %s36_s22 = int_to_ptr.vmem [resolvable:$true] %s35_s22 }
   0x7   :  { %p1995_p1 = scmp.lt.u32.totalorder %s1991_s25, %s2524_s3 }
   0x9   :  { %p1997_p2 = pnand %p1995_p1, %p1992_p0 }
   0xb   :  { %2000 = shalt.err (!%p1997_p2)
}
   0xc   :  { %s2001_s1 = scalar_lea.vmem %s36_s22, 4096  ;;  %p2006_p4 = scmp.lt.s32.totalorder %s36_s22, %s36_s22 }
   0xd   :  { %p2002_p3 = scmp.ne.s32.totalorder %s36_s22, %s2001_s1  ;;  %p2007_p5 = scmp.lt.s32.totalorder %s2001_s1, %s2001_s1 }
   0xf   :  { %p2008_p6 = por %p2007_p5, %p2006_p4 }
  0x11   :  { %p2009_p7 = pnand %p2008_p6, %p2002_p3 }
  0x13   :  { %2012 = shalt.err (!%p2009_p7)
}
  0x14   :  { %s2072_s29 = smov 128   ;;  %s2073_s30 = smov 8  }
  0x15   :  { %41 = dma.hbm_to_vmem [thread:$0]  %s2524_s3, 4096, %s36_s22, [#allocation7], %s2072_s29, %s2072_s29, %s2073_s30  }
  0x16   :  { %s2074_s14 = smov [#allocation9]   ;;  %s2013_s18 = scalar_lea.hbm %s2526_s5, 4096 }
  0x17   :  { %s49_s15 = sshll.u32 %s2074_s14, 4  ;;  %p2014_p8 = scmp.ne.s32.totalorder %s2526_s5, %s2013_s18  ;;  %s50_s15 = int_to_ptr.vmem [resolvable:$true] %s49_s15 }
  0x18   :  { %p2017_p9 = scmp.lt.u32.totalorder %s2013_s18, %s2526_s5 }
  0x1a   :  { %p2019_p10 = pnand %p2017_p9, %p2014_p8 }
  0x1c   :  { %2022 = shalt.err (!%p2019_p10)
}
  0x1d   :  { %s2023_s24 = scalar_lea.vmem %s50_s15, 4096  ;;  %p2028_p12 = scmp.lt.s32.totalorder %s50_s15, %s50_s15 }
  0x1e   :  { %p2024_p11 = scmp.ne.s32.totalorder %s50_s15, %s2023_s24  ;;  %p2029_p13 = scmp.lt.s32.totalorder %s2023_s24, %s2023_s24 }
  0x20   :  { %p2030_p0 = por %p2029_p13, %p2028_p12 }
  0x22   :  { %p2031_p1 = pnand %p2030_p0, %p2024_p11 }
  0x24   :  { %2034 = shalt.err (!%p2031_p1)
}
  0x25   :  { %55 = dma.hbm_to_vmem [thread:$0]  %s2526_s5, 4096, %s50_s15, [#allocation10], %s2072_s29, %s2072_s29, %s2073_s30  }
  0x26   :  { %2061 = dma.done.wait [#allocation7], 4096  }
  0x27   :  { %2062 = vsyncadd [#allocation7], 4294963200 }
  0x28   :  { %2063 = dma.done.wait [#allocation10], 4096  }
  0x29   :  { %2064 = vsyncadd [#allocation10], 4294963200  ;;  %v96_v2 = vlaneseq  ;;  %v1414_v4 = vld [vmem:[%s2530_s9] sm:$0xff]  ;;  %v1415_v5 = vld [vmem:[%s2530_s9 + $0x8] sm:$0xff] }
  0x2a   :  { %v753_v6 = vld [vmem:[#allocation6 + $0x80] sm:$0xff]  ;;  %1416 = vst [vmem:[#allocation3] sm:$0xff] %v1414_v4  ;;  %1417 = vst [vmem:[#allocation3 + $0x8] sm:$0xff] %v1415_v5  ;;  %v754_v8 = vld [vmem:[#allocation6 + $0x88] sm:$0xff] }
  0x2b   :  { %v2178_v3 = vshrl.u32 %v96_v2, 7  ;;  %v737_v9 = vld [vmem:[#allocation6] sm:$0xff]  ;;  %v738_v10 = vld [vmem:[#allocation6 + $0x8] sm:$0xff]  ;;  %v1819_v12 = vpack.c.bf16 %v754_v8, %v753_v6  ;;  %v755_v14 = vld [vmem:[#allocation6 + $0x90] sm:$0xff] }
  0x2c   :  { %v1821_v13 = vpack.c.bf16 %v738_v10, %v737_v9  ;;  %v756_v15 = vld [vmem:[#allocation6 + $0x98] sm:$0xff]  ;;  %v739_v16 = vld [vmem:[#allocation6 + $0x10] sm:$0xff]  ;;  %v757_v19 = vld [vmem:[#allocation6 + $0xa0] sm:$0xff] }
  0x2d   :  { %v2187_v7 = vadd.s32 8, %v2178_v3  ;;  %v99_v11 = vadd.s32 16, %v2178_v3  ;;  %v1823_v17 = vpack.c.bf16 %v756_v15, %v755_v14  ;;  %v740_v18 = vld [vmem:[#allocation6 + $0x18] sm:$0xff]  ;;  %v758_v20 = vld [vmem:[#allocation6 + $0xa8] sm:$0xff]  ;;  %1820 = vmatprep.subr.bf16.mxu0 %v1819_v12  ;;  %v100_v21 = vcvt.s32.f32 %v2178_v3  ;;  %v741_v26 = vld [vmem:[#allocation6 + $0x20] sm:$0xff] }
  0x2e   :  { %1822 = vmatpush3.bf16.msra.mxu0 %v1821_v13  ;;  %v1825_v23 = vpack.c.bf16 %v740_v18, %v739_v16  ;;  %v1827_v25 = vpack.c.bf16 %v758_v20, %v757_v19  ;;  %v742_v27 = vld [vmem:[#allocation6 + $0x28] sm:$0xff]  ;;  %v759_v28 = vld [vmem:[#allocation6 + $0xb0] sm:$0xff]  ;;  %v760_v29 = vld [vmem:[#allocation6 + $0xb8] sm:$0xff] }
  0x2f   :  { %v101_v22 = vcvt.s32.f32 %v2187_v7  ;;  %v102_v24 = vcvt.s32.f32 %v99_v11  ;;  %1824 = vmatprep.subr.bf16.mxu0 %v1823_v17  ;;  %v103_v30 = vmul.f32 0.04347826, %v100_v21  ;;  %v1829_v32 = vpack.c.bf16 %v742_v27, %v741_v26  ;;  %v743_v35 = vld [vmem:[#allocation6 + $0x30] sm:$0xff]  ;;  %v744_v36 = vld [vmem:[#allocation6 + $0x38] sm:$0xff]  ;;  %v761_v37 = vld [vmem:[#allocation6 + $0xc0] sm:$0xff] }
  0x30   :  { %v1831_v34 = vpack.c.bf16 %v760_v29, %v759_v28  ;;  %v762_v38 = vld [vmem:[#allocation6 + $0xc8] sm:$0xff]  ;;  %v1584_v39 = vld [vmem:[%s2523_s2] ss:$0 sm:$0xff]  ;;  %v1833_v42 = vpack.c.bf16 %v744_v36, %v743_v35  ;;  %v745_v43 = vld [vmem:[#allocation6 + $0x40] sm:$0xff]  ;;  %v2077_v35 = vmov 2131351028  }
  0x31   :  { %v104_v31 = vmul.f32 0.04347826, %v101_v22  ;;  %v105_v33 = vmul.f32 0.04347826, %v102_v24  ;;  %v2195_v40 = vmul.f32 %v1584_v39, %v103_v30  ;;  %v746_v44 = vld [vmem:[#allocation6 + $0x48] sm:$0xff]  ;;  %v1835_v46 = vpack.c.bf16 %v762_v38, %v761_v37  ;;  %v763_v49 = vld [vmem:[#allocation6 + $0xd0] sm:$0xff] }
  0x32   :  { %1826 = vmatpush3.bf16.msra.mxu0 %v1825_v23  ;;  %v764_v50 = vld [vmem:[#allocation6 + $0xd8] sm:$0xff]  ;;  %v1837_v53 = vpack.c.bf16 %v746_v44, %v745_v43  ;;  %v747_v54 = vld [vmem:[#allocation6 + $0x50] sm:$0xff]  ;;  %v765_v63 = vld [vmem:[#allocation6 + $0xe0] sm:$0xff]  ;;  %v2078_v37 = vmov 2102212464  }
  0x33   :  { %1828 = vmatprep.subr.bf16.mxu0 %v1827_v25  ;;  %v2197_v41 = vmul.f32 %v1584_v39, %v104_v31  ;;  %v2199_v45 = vmul.f32 %v1584_v39, %v105_v33  ;;  %v116_v47 = vand.u32 2147483647, %v2195_v40  ;;  %v119_v48 = vand.u32 2139095040, %v2195_v40  ;;  %v748_v55 = vld [vmem:[#allocation6 + $0x58] sm:$0xff]  ;;  %v766_v0 = vld [vmem:[#allocation6 + $0xe8] sm:$0xff]  ;;  %v749_v1 = vld [vmem:[#allocation6 + $0x60] sm:$0xff] }
  0x34   :  { %v1839_v61 = vpack.c.bf16 %v764_v50, %v763_v49  ;;  %v1841_v6 = vpack.c.bf16 %v748_v55, %v747_v54  ;;  %v750_v8 = vld [vmem:[#allocation6 + $0x68] sm:$0xff]  ;;  %v767_v9 = vld [vmem:[#allocation6 + $0xf0] sm:$0xff]  ;;  %v768_v10 = vld [vmem:[#allocation6 + $0xf8] sm:$0xff]  ;;  %v1843_v18 = vpack.c.bf16 %v766_v0, %v765_v63  ;;  %v2075_v31 = vmov 683565275  }
  0x35   :  { %v220_v51 = vand.u32 2147483647, %v2197_v41  ;;  %v223_v52 = vand.u32 2139095040, %v2197_v41  ;;  %v120_v56 = vshrl.u32 %v119_v48, 23  ;;  %v123_v57 = vand.u32 8388607, %v116_v47 }
  0x36   :  { %1830 = vmatpush3.bf16.msra.mxu0 %v1829_v32  ;;  %v327_v60 = vand.u32 2139095040, %v2199_v45  ;;  %v751_v12 = vld [vmem:[#allocation6 + $0x70] sm:$0xff]  ;;  %v752_v13 = vld [vmem:[#allocation6 + $0x78] sm:$0xff]  ;;  %v1845_v19 = vpack.c.bf16 %v750_v8, %v749_v1  ;;  %v1847_v20 = vpack.c.bf16 %v768_v10, %v767_v9  ;;  %v2076_v33 = vmov 2475754826  }
  0x37   :  { %1832 = vmatprep.subr.bf16.mxu0 %v1831_v34  ;;  %v224_v58 = vshrl.u32 %v223_v52, 23  ;;  %v227_v59 = vand.u32 8388607, %v220_v51  ;;  %v1585_v62 = vadd.s32 4294967169, %v120_v56  ;;  %v124_v14 = vor.u32 8388608, %v123_v57 }
  0x38   :  { %v328_v5 = vshrl.u32 %v327_v60, 23  ;;  %v1849_v22 = vpack.c.bf16 %v752_v13, %v751_v12  ;;  %v2079_v39 = vmov 920167782   ;;  %v2080_v52 = vmov 1326507024  }
  0x39   :  { %v1589_v4 = vadd.s32 4294967169, %v224_v58  ;;  %v126_v11 = vadd.s32 1, %v1585_v62  ;;  %v228_v15 = vor.u32 8388608, %v227_v59  ;;  %v2210_v26 = vshll.u32 %v124_v14, 8 }
  0x3a   :  { %1834 = vmatpush3.bf16.msra.mxu0 %v1833_v42  ;;  %v1593_v17 = vadd.s32 4294967169, %v328_v5 }
  0x3b   :  { %1836 = vmatprep.subr.bf16.mxu0 %v1835_v46  ;;  %v230_v16 = vadd.s32 1, %v1589_v4  ;;  %vm127_vm0 = vcmp.gt.s32.totalorder %v126_v11, 0  ;;  %v2214_v28 = vshll.u32 %v228_v15, 8 }
  0x3c   :  { %v128_v21 = vsel %vm127_vm0, %v126_v11, 0  ;;  %v2216_v29 = vadd.s32 1, %v1593_v17 }
  0x3d   :  { %vm231_vm1 = vcmp.gt.s32.totalorder %v230_v16, 0  ;;  %v129_v23 = vshrl.u32 %v128_v21, 5  ;;  %v130_v24 = vand.u32 31, %v128_v21 }
  0x3e   :  { %1838 = vmatpush3.bf16.msra.mxu0 %v1837_v53  ;;  %v232_v25 = vsel %vm231_vm1, %v230_v16, 0  ;;  %vm335_vm6 = vcmp.gt.s32.totalorder %v2216_v29, 0 }
  0x3f   :  { %1840 = vmatprep.subr.bf16.mxu0 %v1839_v61  ;;  %v2212_v27 = vand.u32 31, %v232_v25  ;;  %v131_v30 = vsub.s32 32, %v130_v24  ;;  %v133_v32 = vshll.u32 %v2075_v31, %v130_v24  ;;  %v136_v34 = vshll.u32 %v2076_v33, %v130_v24 }
  0x40   :  { %v139_v36 = vshll.u32 %v2077_v35, %v130_v24  ;;  %v142_v38 = vshll.u32 %v2078_v37, %v130_v24  ;;  %v145_v42 = vshll.u32 %v2079_v39, %v130_v24  ;;  %vm148_vm2 = vcmp.lt.s32.totalorder %v129_v23, 1 }
  0x41   :  { %v2223_v43 = vshrl.u32 %v232_v25, 5  ;;  %v132_v44 = vshrl.u32 %v2075_v31, %v131_v30  ;;  %v134_v46 = vshrl.u32 %v2076_v33, %v131_v30  ;;  %v137_v48 = vshrl.u32 %v2077_v35, %v131_v30 }
  0x42   :  { %1842 = vmatpush3.bf16.msra.mxu0 %v1841_v6  ;;  %v140_v49 = vshrl.u32 %v2078_v37, %v131_v30  ;;  %v143_v50 = vshrl.u32 %v2079_v39, %v131_v30  ;;  %v146_v53 = vshrl.u32 %v2080_v52, %v131_v30  ;;  %vm149_vm3 = vcmp.lt.s32.totalorder %v129_v23, 2 }
  0x43   :  { %1844 = vmatprep.subr.bf16.mxu0 %v1843_v18  ;;  %vm151_vm4 = vcmp.lt.s32.totalorder %v129_v23, 4  ;;  %v135_v54 = vor.u32 %v134_v46, %v133_v32  ;;  %v138_v55 = vor.u32 %v137_v48, %v136_v34  ;;  %v235_v57 = vsub.s32 32, %v2212_v27 }
  0x44   :  { %v141_v56 = vor.u32 %v140_v49, %v139_v36  ;;  %v144_v58 = vor.u32 %v143_v50, %v142_v38  ;;  %v147_v59 = vor.u32 %v146_v53, %v145_v42  ;;  %vm150_vm5 = vcmp.lt.s32.totalorder %v129_v23, 3 }
  0x45   :  { %v237_v60 = vshll.u32 %v2075_v31, %v2212_v27  ;;  %v152_v61 = vsel %vm148_vm2, %v132_v44, %v135_v54  ;;  %v156_v63 = vsel %vm148_vm2, %v135_v54, %v138_v55  ;;  %v240_v6 = vshll.u32 %v2076_v33, %v2212_v27 }
  0x46   :  { %1846 = vmatpush3.bf16.msra.mxu0 %v1845_v19  ;;  %v153_v62 = vsel %vm151_vm4, %v141_v56, 2102212464  ;;  %v160_v0 = vsel %vm148_vm2, %v138_v55, %v141_v56  ;;  %v157_v4 = vsel %vm151_vm4, %v144_v58, 920167782  ;;  %v161_v5 = vsel %vm151_vm4, %v147_v59, 1326507024 }
  0x47   :  { %1848 = vmatprep.subr.bf16.mxu0 %v1847_v20  ;;  %v154_v1 = vsel %vm150_vm5, %v138_v55, %v153_v62  ;;  %v158_v8 = vsel %vm150_vm5, %v141_v56, %v157_v4  ;;  %v162_v9 = vsel %vm150_vm5, %v144_v58, %v161_v5  ;;  %v236_v10 = vshrl.u32 %v2075_v31, %v235_v57 }
  0x48   :  { %v238_v11 = vshrl.u32 %v2076_v33, %v235_v57  ;;  %v155_v12 = vsel %vm149_vm3, %v152_v61, %v154_v1  ;;  %v159_v13 = vsel %vm149_vm3, %v156_v63, %v158_v8  ;;  %v163_v14 = vsel %vm149_vm3, %v160_v0, %v162_v9 }
  0x49   :  { %v241_v15 = vshrl.u32 %v2077_v35, %v235_v57  ;;  %v2250_v16 = vmul.u32.u64.low %v2210_v26, %v163_v14  ;;  %v2251_v17 = vmul.u32.u64.high %v2210_v26, %v163_v14, %v2250_v16  ;;  %v244_v24 = vshrl.u32 %v2078_v37, %v235_v57 }
  0x4a   :  { %1850 = vmatpush3.bf16.msra.mxu0 %v1849_v22  ;;  %v2254_v18 = vmul.u32.u64.low %v2210_v26, %v159_v13  ;;  %v2255_v19 = vmul.u32.u64.high %v2210_v26, %v159_v13, %v2254_v18  ;;  %v239_v20 = vor.u32 %v238_v11, %v237_v60  ;;  %v243_v22 = vshll.u32 %v2077_v35, %v2212_v27 }
  0x4b   :  { %v242_v21 = vor.u32 %v241_v15, %v240_v6  ;;  %v246_v23 = vshll.u32 %v2078_v37, %v2212_v27  ;;  %v247_v25 = vshrl.u32 %v2079_v39, %v235_v57  ;;  %v249_v30 = vshll.u32 %v2079_v39, %v2212_v27 }
  0x4c   :  { %v250_v32 = vshrl.u32 %v2080_v52, %v235_v57  ;;  %v171_v34 = vmul.u32 %v2210_v26, %v155_v12  ;;  %v245_v36 = vor.u32 %v244_v24, %v243_v22  ;;  %vm252_vm7 = vcmp.lt.s32.totalorder %v2223_v43, 1 }
  0x4d   :  { %vm253_vm8 = vcmp.lt.s32.totalorder %v2223_v43, 2  ;;  %vm173_vm9 = vc.u32 %v2251_v17, %v2254_v18  ;;  %v174_v38 = vadd.s32 1, %v2255_v19  ;;  %v248_v42 = vor.u32 %v247_v25, %v246_v23 }
  0x4e   :  { %vm254_vm10 = vcmp.lt.s32.totalorder %v2223_v43, 3  ;;  %v251_v44 = vor.u32 %v250_v32, %v249_v30  ;;  %vm255_vm11 = vcmp.lt.s32.totalorder %v2223_v43, 4  ;;  %v256_v27 = vsel %vm252_vm7, %v236_v10, %v239_v20 }
  0x4f   :  { %v260_v46 = vsel %vm252_vm7, %v239_v20, %v242_v21  ;;  %v175_v26 = vsel %vm173_vm9, %v174_v38, %v2255_v19  ;;  %v257_v48 = vsel %vm255_vm11, %v245_v36, 2102212464  ;;  %v261_v49 = vsel %vm255_vm11, %v248_v42, 920167782 }
  0x50   :  { %v264_v50 = vsel %vm252_vm7, %v242_v21, %v245_v36  ;;  %v176_v53 = vadd.s32 %v175_v26, %v171_v34  ;;  %v258_v54 = vsel %vm254_vm10, %v242_v21, %v257_v48  ;;  %v262_v55 = vsel %vm254_vm10, %v245_v36, %v261_v49 }
  0x51   :  { %v265_v56 = vsel %vm255_vm11, %v251_v44, 1326507024  ;;  %v259_v57 = vsel %vm253_vm8, %v256_v27, %v258_v54  ;;  %v263_v58 = vsel %vm253_vm8, %v260_v46, %v262_v55  ;;  %v336_v60 = vsel %vm335_vm6, %v2216_v29, 0 }
  0x52   :  { %v266_v59 = vsel %vm254_vm10, %v248_v42, %v265_v56  ;;  %v177_v61 = vadd.s32 536870912, %v176_v53  ;;  %v2286_v63 = vmul.u32.u64.low %v2214_v28, %v263_v58  ;;  %v2287_v0 = vmul.u32.u64.high %v2214_v28, %v263_v58, %v2286_v63 }
  0x53   :  { %v267_v62 = vsel %vm253_vm8, %v264_v50, %v266_v59  ;;  %v338_v6 = vand.u32 31, %v336_v60  ;;  %v275_v8 = vmul.u32 %v2214_v28, %v259_v57  ;;  %v324_v43 = vand.u32 2147483647, %v2199_v45 }
  0x54   :  { %v2291_v1 = vmul.u32.u64.low %v2214_v28, %v267_v62  ;;  %v2292_v4 = vmul.u32.u64.high %v2214_v28, %v267_v62, %v2291_v1  ;;  %v2294_v5 = vshrl.u32 %v177_v61, 30  ;;  %v278_v9 = vadd.s32 1, %v2287_v0 }
  0x55   :  { %v339_v12 = vsub.s32 32, %v338_v6  ;;  %v331_v16 = vand.u32 8388607, %v324_v43  ;;  %v337_v28 = vshrl.u32 %v336_v60, 5  ;;  %v341_v19 = vshll.u32 %v2075_v31, %v338_v6 }
  0x56   :  { %v179_v29 = vshll.u32 %v2294_v5, 30  ;;  %vm277_vm12 = vc.u32 %v2292_v4, %v2286_v63  ;;  %v344_v22 = vshll.u32 %v2076_v33, %v338_v6  ;;  %v347_v25 = vshll.u32 %v2077_v35, %v338_v6 }
  0x57   :  { %v279_v11 = vsel %vm277_vm12, %v278_v9, %v2287_v0  ;;  %v342_v21 = vshrl.u32 %v2076_v33, %v339_v12  ;;  %v345_v24 = vshrl.u32 %v2077_v35, %v339_v12  ;;  %v348_v30 = vshrl.u32 %v2078_v37, %v339_v12 }
  0x58   :  { %v180_v10 = vsub.s32 %v176_v53, %v179_v29  ;;  %v280_v13 = vadd.s32 %v279_v11, %v275_v8  ;;  %v350_v32 = vshll.u32 %v2078_v37, %v338_v6  ;;  %v351_v36 = vshrl.u32 %v2079_v39, %v339_v12 }
  0x59   :  { %v353_v42 = vshll.u32 %v2079_v39, %v338_v6  ;;  %v354_v44 = vshrl.u32 %v2080_v52, %v339_v12  ;;  %vm359_vm13 = vcmp.lt.s32.totalorder %v337_v28, 4  ;;  %v172_v33 = vadd.s32 %v2254_v18, %v2251_v17 }
  0x5a   :  { %v182_v14 = vsub.s32 0, %v180_v10  ;;  %v281_v15 = vadd.s32 536870912, %v280_v13  ;;  %v332_v46 = vor.u32 8388608, %v331_v16  ;;  %v352_v35 = vor.u32 %v351_v36, %v350_v32 }
  0x5b   :  { %v343_v48 = vor.u32 %v342_v21, %v341_v19  ;;  %v346_v49 = vor.u32 %v345_v24, %v344_v22  ;;  %v349_v37 = vor.u32 %v348_v30, %v347_v25  ;;  %vm356_vm15 = vcmp.lt.s32.totalorder %v337_v28, 1 }
  0x5c   :  { %v1586_v20 = vmin.u32 %v182_v14, %v180_v10  ;;  %v2309_v23 = vshrl.u32 %v281_v15, 30  ;;  %vm358_vm0 = vcmp.lt.s32.totalorder %v337_v28, 3  ;;  %v365_v50 = vsel %vm359_vm13, %v352_v35, 920167782 }
  0x5d   :  { %v340_v52 = vshrl.u32 %v2075_v31, %v339_v12  ;;  %v355_v54 = vor.u32 %v354_v44, %v353_v42  ;;  %v361_v18 = vsel %vm359_vm13, %v349_v37, 2102212464  ;;  %vm357_vm1 = vcmp.lt.s32.totalorder %v337_v28, 2 }
  0x5e   :  { %v184_v34 = vclz %v1586_v20  ;;  %v283_v38 = vshll.u32 %v2309_v23, 30  ;;  %v364_v58 = vsel %vm356_vm15, %v343_v48, %v346_v49  ;;  %v366_v59 = vsel %vm358_vm0, %v349_v37, %v365_v50 }
  0x5f   :  { %v372_v62 = vshll.u32 %v332_v46, 8  ;;  %v360_v1 = vsel %vm356_vm15, %v340_v52, %v343_v48  ;;  %v362_v31 = vsel %vm358_vm0, %v346_v49, %v361_v18  ;;  %v368_v6 = vsel %vm356_vm15, %v346_v49, %v349_v37 }
  0x60   :  { %v1587_v27 = vadd.s32 4294967294, %v184_v34  ;;  %v284_v26 = vsub.s32 %v280_v13, %v283_v38  ;;  %v367_v9 = vsel %vm357_vm1, %v364_v58, %v366_v59  ;;  %v202_v11 = vsub.s32 4, %v2294_v5 }
  0x61   :  { %v276_v12 = vadd.s32 %v2286_v63, %v2292_v4  ;;  %v363_v16 = vsel %vm357_vm1, %v360_v1, %v362_v31  ;;  %v2336_v21 = vmul.u32.u64.low %v372_v62, %v367_v9  ;;  %v2337_v22 = vmul.u32.u64.high %v372_v62, %v367_v9, %v2336_v21 }
  0x62   :  { %vm1588_vm14 = vcmp.lt.s32.totalorder %v1587_v27, 0  ;;  %v286_v39 = vsub.s32 0, %v284_v26  ;;  %v379_v38 = vmul.u32 %v372_v62, %v363_v16  ;;  %vm118_vm3 = vcmp.lt.s32.totalorder %v2195_v40, 0 }
  0x63   :  { %v187_v53 = vsel %vm1588_vm14, 0, %v1587_v27  ;;  %v382_v28 = vadd.s32 1, %v2337_v22  ;;  %vm117_vm4 = vcmp.le.f32.partialorder %v116_v47, 0.7853982  ;;  %v203_v27 = vsel %vm118_vm3, %v202_v11, %v2294_v5 }
  0x64   :  { %v188_v55 = vsub.s32 32, %v187_v53  ;;  %v189_v56 = vshll.u32 %v180_v10, %v187_v53  ;;  %v192_v17 = vsub.s32 4294967266, %v187_v53  ;;  %v1590_v57 = vmin.u32 %v286_v39, %v284_v26 }
  0x65   :  { %v369_v10 = vsel %vm359_vm13, %v355_v54, 1326507024  ;;  %v205_v50 = vsel %vm117_vm4, 0, %v203_v27  ;;  %v306_v5 = vsub.s32 4, %v2309_v23  ;;  %vm222_vm6 = vcmp.lt.s32.totalorder %v2197_v41, 0 }
  0x66   :  { %v190_v60 = vshrl.u32 %v172_v33, %v188_v55  ;;  %v193_v61 = vadd.s32 127, %v192_v17  ;;  %v288_v0 = vclz %v1590_v57  ;;  %v370_v19 = vsel %vm358_vm0, %v352_v35, %v369_v10 }
  0x67   :  { %v371_v20 = vsel %vm357_vm1, %v368_v6, %v370_v19  ;;  %v209_v54 = vadd.s32 3, %v205_v50  ;;  %vm221_vm7 = vcmp.le.f32.partialorder %v220_v51, 0.7853982  ;;  %v307_v57 = vsel %vm222_vm6, %v306_v5, %v2309_v23 }
  0x68   :  { %v191_v8 = vor.u32 %v190_v60, %v189_v56  ;;  %v194_v29 = vshll.u32 %v193_v61, 23  ;;  %v1591_v13 = vadd.s32 4294967294, %v288_v0  ;;  %v521_v58 = vand.u32 3, %v205_v50 }
  0x69   :  { %v2340_v30 = vmul.u32.u64.low %v372_v62, %v371_v20  ;;  %v2341_v32 = vmul.u32.u64.high %v372_v62, %v371_v20, %v2340_v30  ;;  %v210_v59 = vand.u32 3, %v209_v54  ;;  %v309_v0 = vsel %vm221_vm7, 0, %v307_v57 }
  0x6a   :  { %v195_v14 = vor.u32 4788187, %v194_v29  ;;  %v198_v15 = vcvt.s32.f32 %v191_v8  ;;  %vm1592_vm2 = vcmp.lt.s32.totalorder %v1591_v13, 0  ;;  %vm526_vm8 = vcmp.eq.s32.totalorder %v521_v58, 2 }
  0x6b   :  { %v291_v25 = vsel %vm1592_vm2, 0, %v1591_v13  ;;  %vm381_vm5 = vc.u32 %v2341_v32, %v2336_v21  ;;  %vm215_vm9 = vcmp.eq.s32.totalorder %v210_v59, 2  ;;  %vm523_vm10 = vcmp.eq.s32.totalorder %v521_v58, 0 }
  0x6c   :  { %v196_v24 = vand.u32 2147483647, %v195_v14  ;;  %v292_v63 = vsub.s32 32, %v291_v25  ;;  %v293_v4 = vshll.u32 %v284_v26, %v291_v25  ;;  %v296_v34 = vsub.s32 4294967266, %v291_v25 }
  0x6d   :  { %v383_v26 = vsel %vm381_vm5, %v382_v28, %v2337_v22  ;;  %vm212_vm11 = vcmp.eq.s32.totalorder %v210_v59, 0  ;;  %v313_v51 = vadd.s32 3, %v309_v0  ;;  %vm522_vm12 = vcmp.lt.s32.totalorder %v521_v58, 2 }
  0x6e   :  { %v199_v36 = vmul.f32 %v198_v15, %v196_v24  ;;  %v294_v42 = vshrl.u32 %v276_v12, %v292_v63  ;;  %v297_v44 = vadd.s32 127, %v296_v34  ;;  %v384_v49 = vadd.s32 %v383_v26, %v379_v38 }
  0x6f   :  { %vm211_vm13 = vcmp.lt.s32.totalorder %v210_v59, 2  ;;  %vm208_vm14 = vweird.f32 %v2195_v40  ;;  %v624_v19 = vand.u32 3, %v309_v0  ;;  %v314_v20 = vand.u32 3, %v313_v51 }
  0x70   :  { %v200_v33 = vxor.u32 2147483648, %v199_v36  ;;  %v295_v46 = vor.u32 %v294_v42, %v293_v4  ;;  %v298_v35 = vshll.u32 %v297_v44, 23  ;;  %v385_v52 = vadd.s32 536870912, %v384_v49 }
  0x71   :  { %v380_v25 = vadd.s32 %v2336_v21, %v2341_v32  ;;  %vm626_vm0 = vcmp.eq.s32.totalorder %v624_v19, 0  ;;  %vm629_vm1 = vcmp.eq.s32.totalorder %v624_v19, 2  ;;  %vm319_vm2 = vcmp.eq.s32.totalorder %v314_v20, 2 }
  0x72   :  { %v201_v48 = vsel %vm118_vm3, %v200_v33, %v199_v36  ;;  %v299_v53 = vor.u32 4788187, %v298_v35  ;;  %v302_v39 = vcvt.s32.f32 %v295_v46  ;;  %v2353_v55 = vshrl.u32 %v385_v52, 30 }
  0x73   :  { %v204_v37 = vsel %vm117_vm4, %v2195_v40, %v201_v48  ;;  %vm316_vm3 = vcmp.eq.s32.totalorder %v314_v20, 0  ;;  %vm312_vm4 = vweird.f32 %v2197_v41  ;;  %vm625_vm5 = vcmp.lt.s32.totalorder %v624_v19, 2 }
  0x74   :  { %1943 = vcosq.f32 %v204_v37  ;;  %v300_v47 = vand.u32 2147483647, %v299_v53  ;;  %v387_v17 = vshll.u32 %v2353_v55, 30  ;;  %v2374_v51 = vand.u32 127, %v96_v2 }
  0x75   :  { %1945 = vsinq.f32 %v204_v37 }
  0x76   :  { %v303_v56 = vmul.f32 %v302_v39, %v300_v47  ;;  %v388_v60 = vsub.s32 %v384_v49, %v387_v17 }
  0x78   :  { %v304_v18 = vxor.u32 2147483648, %v303_v56  ;;  %v390_v1 = vsub.s32 0, %v388_v60 }
  0x7a   :  { %v305_v61 = vsel %vm222_vm6, %v304_v18, %v303_v56  ;;  %v1594_v6 = vmin.u32 %v390_v1, %v388_v60  ;;  %vm315_vm6 = vcmp.lt.s32.totalorder %v314_v20, 2 }
  0x7b   :  { %v308_v62 = vsel %vm221_vm7, %v2197_v41, %v305_v61  ;;  %v410_v41 = vsub.s32 4, %v2353_v55  ;;  %vm326_vm7 = vcmp.lt.s32.totalorder %v2199_v45, 0 }
  0x7c   :  { %1947 = vcosq.f32 %v308_v62  ;;  %v392_v9 = vclz %v1594_v6 }
  0x7d   :  { %1949 = vsinq.f32 %v308_v62  ;;  %v411_v5 = vsel %vm326_vm7, %v410_v41, %v2353_v55 }
  0x7e   :  { %v1944_v31 = vpop.eup %1943  ;;  %v1595_v14 = vadd.s32 4294967294, %v392_v9 }
  0x7f   :  { %v1946_v8 = vpop.eup %1945  ;;  %v216_v29 = vxor.u32 2147483648, %v1944_v31 }
  0x80   :  { %v213_v23 = vxor.u32 2147483648, %v1946_v8  ;;  %vm1596_vm15 = vcmp.lt.s32.totalorder %v1595_v14, 0 }
  0x81   :  { %v528_v10 = vsel %vm526_vm8, %v216_v29, %v1946_v8  ;;  %v217_v11 = vsel %vm215_vm9, %v216_v29, %v1946_v8  ;;  %v395_v30 = vsel %vm1596_vm15, 0, %v1595_v14  ;;  %vm325_vm8 = vcmp.le.f32.partialorder %v324_v43, 0.7853982 }
  0x82   :  { %v525_v12 = vsel %vm523_vm10, %v1944_v31, %v213_v23  ;;  %v214_v13 = vsel %vm212_vm11, %v1944_v31, %v213_v23  ;;  %v396_v63 = vsub.s32 32, %v395_v30  ;;  %v397_v40 = vshll.u32 %v388_v60, %v395_v30 }
  0x83   :  { %v529_v15 = vsel %vm522_vm12, %v525_v12, %v528_v10  ;;  %v218_v16 = vsel %vm211_vm13, %v214_v13, %v217_v11  ;;  %v400_v4 = vsub.s32 4294967266, %v395_v30  ;;  %v413_v17 = vsel %vm325_vm8, 0, %v411_v5  ;;  %v1609_v10 = vld [vmem:[%s2525_s4] ss:$0 sm:$0xff] }
  0x84   :  { %v530_v22 = vsel %vm208_vm14, nan, %v529_v15  ;;  %v219_v24 = vsel %vm208_vm14, nan, %v218_v16  ;;  %v398_v42 = vshrl.u32 %v380_v25, %v396_v63  ;;  %v417_v18 = vadd.s32 3, %v413_v17  ;;  %v930_v5 = vld [vmem:[#allocation9 + $0x38] sm:$0xff] }
  0x85   :  { %840 = vmatprep.mubr.f32.mxu0 %v530_v22  ;;  %v401_v44 = vadd.s32 127, %v400_v4  ;;  %v727_v57 = vand.u32 3, %v413_v17  ;;  %vm416_vm15 = vweird.f32 %v2199_v45  ;;  %v2081_v12 = vmov 0.0  }
  0x86   :  { %841 = vmatmul.mubr.f32.vlgmr.msra.gmra.mrb[0].mxu0 %v219_v24  ;;  %v1948_v34 = vpop.eup %1947  ;;  %v399_v33 = vor.u32 %v398_v42, %v397_v40  ;;  %v418_v58 = vand.u32 3, %v417_v18  ;;  %v925_v42 = vld [vmem:[#allocation9 + $0x10] sm:$0xff]  ;;  %v931_v18 = vld [vmem:[#allocation9 + $0x40] sm:$0xff] }
  0x87   :  { %v1950_v36 = vpop.eup %1949  ;;  %v320_v38 = vxor.u32 2147483648, %v1948_v34  ;;  %v402_v27 = vshll.u32 %v401_v44, 23  ;;  %vm732_vm9 = vcmp.eq.s32.totalorder %v727_v57, 2  ;;  %vm729_vm11 = vcmp.eq.s32.totalorder %v727_v57, 0 }
  0x88   :  { %v317_v28 = vxor.u32 2147483648, %v1950_v36  ;;  %v406_v37 = vcvt.s32.f32 %v399_v33  ;;  %vm423_vm10 = vcmp.eq.s32.totalorder %v418_v58, 2  ;;  %vm420_vm12 = vcmp.eq.s32.totalorder %v418_v58, 0  ;;  %v927_v33 = vld [vmem:[#allocation9 + $0x20] sm:$0xff] }
  0x89   :  { %v631_v21 = vsel %vm629_vm1, %v320_v38, %v1950_v36  ;;  %v321_v32 = vsel %vm319_vm2, %v320_v38, %v1950_v36  ;;  %v403_v49 = vor.u32 4788187, %v402_v27  ;;  %vm728_vm13 = vcmp.lt.s32.totalorder %v727_v57, 2  ;;  %v923_v36 = vld [vmem:[#allocation9] sm:$0xff]  ;;  %v924_v38 = vld [vmem:[#allocation9 + $0x8] sm:$0xff] }
  0x8a   :  { %v628_v46 = vsel %vm626_vm0, %v1948_v34, %v317_v28  ;;  %v318_v35 = vsel %vm316_vm3, %v1948_v34, %v317_v28  ;;  %vm419_vm14 = vcmp.lt.s32.totalorder %v418_v58, 2  ;;  %vm861_vm0 = vcmp.lt.s32.totalorder %v2374_v51, 32  ;;  %v928_v27 = vld [vmem:[#allocation9 + $0x28] sm:$0xff] }
  0x8b   :  { %v632_v26 = vsel %vm625_vm5, %v628_v46, %v631_v21  ;;  %v322_v48 = vsel %vm315_vm6, %v318_v35, %v321_v32  ;;  %v404_v39 = vand.u32 2147483647, %v403_v49  ;;  %v2381_v13 = vsel %vm861_vm0, 1.0, %v2081_v12  ;;  %v926_v21 = vld [vmem:[#allocation9 + $0x18] sm:$0xff]  ;;  %v932_v57 = vld [vmem:[#allocation9 + $0x48] sm:$0xff] }
  0x8c   :  { %v633_v50 = vsel %vm312_vm4, nan, %v632_v26  ;;  %v323_v53 = vsel %vm312_vm4, nan, %v322_v48  ;;  %v2082_v44 = vmov 0.0|0.0   ;;  %v1852_v28 = vpack.c.bf16 %v924_v38, %v923_v36 }
  0x8d   :  { %845 = vmatprep.mubr.f32.mxu0 %v633_v50  ;;  %v407_v52 = vmul.f32 %v406_v37, %v404_v39  ;;  %1851 = vmatprep.subr.bf16.mxu1 %v2082_v44  ;;  %v1855_v32 = vpack.c.bf16 %v926_v21, %v925_v42  ;;  %v1858_v46 = vpack.c.bf16 %v928_v27, %v927_v33  ;;  %vm2083_vm1 = vmmov 0   ;;  %v1613_v21 = vld [vmem:[%s2527_s6] ss:$0 sm:$0xff] }
  0x8e   :  { %846 = vmatmul.mubr.f32.gmra.mrb[2].mxu0 %v323_v53  ;;  %1875 = vmatprep.subr.bf16.mxu0 %v2082_v44  ;;  %vm90_vm2 = vcmask 0   ;;  %vm1348_vm3 = vcmp.eq.s32.totalorder %v2178_v3, %v2374_v51  ;;  %vm1349_vm4 = vcmp.eq.s32.totalorder %v2187_v7, %v2374_v51  ;;  %vm1356_vm5 = vcmask 130048  }
  0x8f   :  { %v408_v47 = vxor.u32 2147483648, %v407_v52  ;;  %1853 = vmatpush3.bf16.msra.mxu1 %v1852_v28  ;;  %1749 = vmatprep.mubr.msk.f32.mxu1 %vm2083_vm1, %v2081_v12 }
  0x90   :  { %1854 = vmatprep.subr.bf16.mxu1 %v2082_v44 }
  0x91   :  { %v409_v54 = vsel %vm326_vm7, %v408_v47, %v407_v52  ;;  %v929_v47 = vld [vmem:[#allocation9 + $0x30] sm:$0xff] }
  0x92   :  { %v412_v56 = vsel %vm325_vm8, %v2199_v45, %v409_v54  ;;  %v1861_v54 = vpack.c.bf16 %v930_v5, %v929_v47  ;;  %v1091_v5 = vld [vmem:[#allocation9 + $0x80] sm:$0xff] }
  0x93   :  { %1951 = vcosq.f32 %v412_v56  ;;  %1856 = vmatpush3.bf16.msra.mxu1 %v1855_v32 }
  0x94   :  { %1953 = vsinq.f32 %v412_v56  ;;  %1857 = vmatprep.subr.bf16.mxu1 %v2082_v44 }
  0x97   :  { %1859 = vmatpush3.bf16.msra.mxu1 %v1858_v46 }
  0x98   :  { %1860 = vmatprep.subr.bf16.mxu1 %v2082_v44 }
  0x9b   :  { %1862 = vmatpush3.bf16.msra.mxu1 %v1861_v54  ;;  %v1092_v54 = vld [vmem:[#allocation9 + $0x88] sm:$0xff] }
  0x9c   :  { %1863 = vmatprep.subr.bf16.mxu1 %v2082_v44 }
  0x9d   :  { %v1952_v59 = vpop.eup %1951 }
  0x9e   :  { %v1954_v60 = vpop.eup %1953  ;;  %v424_v61 = vxor.u32 2147483648, %v1952_v59 }
  0x9f   :  { %v421_v43 = vxor.u32 2147483648, %v1954_v60 }
  0xa0   :  { %v734_v55 = vsel %vm732_vm9, %v424_v61, %v1954_v60  ;;  %v425_v62 = vsel %vm423_vm10, %v424_v61, %v1954_v60 }
  0xa1   :  { %v731_v0 = vsel %vm729_vm11, %v1952_v59, %v421_v43  ;;  %v422_v1 = vsel %vm420_vm12, %v1952_v59, %v421_v43  ;;  %v1864_v59 = vpack.c.bf16 %v932_v57, %v931_v18  ;;  %v933_v43 = vld [vmem:[#allocation9 + $0x50] sm:$0xff]  ;;  %v1094_v18 = vld [vmem:[#allocation9 + $0x98] sm:$0xff] }
  0xa2   :  { %v735_v31 = vsel %vm728_vm13, %v731_v0, %v734_v55  ;;  %v426_v6 = vsel %vm419_vm14, %v422_v1, %v425_v62  ;;  %v934_v55 = vld [vmem:[#allocation9 + $0x58] sm:$0xff]  ;;  %v935_v0 = vld [vmem:[#allocation9 + $0x60] sm:$0xff]  ;;  %v936_v1 = vld [vmem:[#allocation9 + $0x68] sm:$0xff] }
  0xa3   :  { %v736_v8 = vsel %vm416_vm15, nan, %v735_v31  ;;  %v427_v29 = vsel %vm416_vm15, nan, %v426_v6  ;;  %1865 = vmatpush3.bf16.msra.mxu1 %v1864_v59  ;;  %v1867_v62 = vpack.c.bf16 %v934_v55, %v933_v43  ;;  %v1870_v31 = vpack.c.bf16 %v936_v1, %v935_v0  ;;  %v937_v6 = vld [vmem:[#allocation9 + $0x70] sm:$0xff]  ;;  %v1096_v59 = vld [vmem:[#allocation9 + $0xa8] sm:$0xff] }
  0xa4   :  { %850 = vmatprep.mubr.f32.mxu0 %v736_v8  ;;  %1866 = vmatprep.subr.bf16.mxu1 %v2082_v44  ;;  %v938_v8 = vld [vmem:[#allocation9 + $0x78] sm:$0xff] }
  0xa5   :  { %851 = vmatmul.mubr.f32.gmra.mrb[4].mxu0 %v427_v29  ;;  %v1873_v29 = vpack.c.bf16 %v938_v8, %v937_v6 }
  0xa6   :  { %1790 = vmatprep.mubr.msk.f32.mxu0 %vm2083_vm1, %v2081_v12 }
  0xa7   :  { %1868 = vmatpush3.bf16.msra.mxu1 %v1867_v62 }
  0xa8   :  { %1869 = vmatprep.subr.bf16.mxu1 %v2082_v44 }
  0xab   :  { %1871 = vmatpush3.bf16.msra.mxu1 %v1870_v31 }
  0xac   :  { %1872 = vmatprep.subr.bf16.mxu1 %v2082_v44 }
  0xaf   :  { %1874 = vmatpush3.bf16.msra.mxu1 %v1873_v29 }
  0xb0   :  { %1899 = vmatprep.subr.bf16.mxu1 %v2082_v44 }
 0x159   :  { %v1662_v23 = vpop.f32.mrb[0].mxu0 }
 0x15a   :  { %v1663_v9 = vpop.f32.mrb[1].mxu0 }
 0x15b   :  { %v1664_v45 = vadd.f32 %v1663_v9, %v1662_v23 }
 0x15d   :  { %v843_v11 = vadd.f32 %v1664_v45, %v1609_v10 }
 0x15f   :  { %v856_v14 = vmax.f32 %v843_v11, 0.0 }
 0x161   :  { %v866_v15 = vmul.f32 %v2381_v13, %v856_v14  ;;  %v1665_v16 = vpop.f32.mrb[2].mxu0 }
 0x162   :  { %v1666_v2 = vpop.f32.mrb[3].mxu0 }
 0x163   :  { %869 = vadd.xlane.f32.xlu0 %v866_v15  ;;  %v1667_v19 = vadd.f32 %v1666_v2, %v1665_v16  ;;  %v1611_v16 = vld [vmem:[%s2528_s7] ss:$0 sm:$0xff] }
 0x165   :  { %v848_v20 = vadd.f32 %v1667_v19, %v1609_v10  ;;  %v1612_v19 = vld [vmem:[%s2529_s8] ss:$0 sm:$0xff] }
 0x167   :  { %v857_v22 = vmax.f32 %v848_v20, 0.0 }
 0x169   :  { %v867_v24 = vmul.f32 %v2381_v13, %v857_v22 }
 0x16b   :  { %871 = vadd.xlane.f32.xlu0 %v867_v24 }
 0x178   :  { %v1668_v25 = vpop.f32.mrb[4].mxu0 }
 0x179   :  { %v1669_v30 = vpop.f32.mrb[5].mxu0 }
 0x17a   :  { %v1670_v63 = vadd.f32 %v1669_v30, %v1668_v25 }
 0x17c   :  { %v853_v40 = vadd.f32 %v1670_v63, %v1609_v10 }
 0x17e   :  { %v858_v4 = vmax.f32 %v853_v40, 0.0 }
 0x180   :  { %v868_v34 = vmul.f32 %v2381_v13, %v858_v4 }
 0x182   :  { %873 = vadd.xlane.f32.xlu1 %v868_v34 }
 0x1f0   :  { %v870_v35 = vpop.xlane.xlu0 %869 }
 0x1f1   :  { %v875_v26 = vmul.f32 0.03125, %v870_v35 }
 0x1f3   :  { %v878_v48 = vsub.f32 %v856_v14, %v875_v26 }
 0x1f5   :  { %v881_v49 = vmul.f32 %v2381_v13, %v878_v48 }
 0x1f7   :  { %v884_v37 = vmul.f32 %v881_v49, %v881_v49 }
 0x1f8   :  { %v872_v50 = vpop.xlane.xlu0 %871 }
 0x1f9   :  { %887 = vadd.xlane.f32.xlu1 %v884_v37  ;;  %v876_v53 = vmul.f32 0.03125, %v872_v50 }
 0x1fb   :  { %v879_v39 = vsub.f32 %v857_v22, %v876_v53 }
 0x1fd   :  { %v882_v41 = vmul.f32 %v2381_v13, %v879_v39 }
 0x1ff   :  { %v885_v52 = vmul.f32 %v882_v41, %v882_v41 }
 0x201   :  { %889 = vadd.xlane.f32.xlu0 %v885_v52 }
 0x20f   :  { %v874_v56 = vpop.xlane.xlu1 %873 }
 0x210   :  { %v877_v17 = vmul.f32 0.03125, %v874_v56  ;;  %v1093_v56 = vld [vmem:[#allocation9 + $0x90] sm:$0xff] }
 0x211   :  { %v1879_v57 = vpack.c.bf16 %v1094_v18, %v1093_v56  ;;  %v1619_v18 = vld [vmem:[%s2527_s6 + $0x1] ss:$0 sm:$0xff] }
 0x212   :  { %v880_v58 = vsub.f32 %v858_v4, %v877_v17  ;;  %v1876_v17 = vpack.c.bf16 %v1092_v54, %v1091_v5 }
 0x214   :  { %v883_v60 = vmul.f32 %v2381_v13, %v880_v58  ;;  %1877 = vmatpush3.bf16.msra.mxu0 %v1876_v17  ;;  %v1095_v58 = vld [vmem:[#allocation9 + $0xa0] sm:$0xff] }
 0x215   :  { %1878 = vmatprep.subr.bf16.mxu0 %v2082_v44 }
 0x216   :  { %v886_v61 = vmul.f32 %v883_v60, %v883_v60 }
 0x218   :  { %891 = vadd.xlane.f32.xlu1 %v886_v61  ;;  %1880 = vmatpush3.bf16.msra.mxu0 %v1879_v57 }
 0x219   :  { %1881 = vmatprep.subr.bf16.mxu0 %v2082_v44 }
 0x286   :  { %v888_v23 = vpop.xlane.xlu1 %887 }
 0x287   :  { %v893_v9 = vmul.f32 0.03125, %v888_v23 }
 0x289   :  { %v896_v10 = vadd.f32 1e-05, %v893_v9 }
 0x28b   :  { %1955 = vrsqrt.f32 %v896_v10 }
 0x28e   :  { %v890_v45 = vpop.xlane.xlu0 %889 }
 0x28f   :  { %v894_v11 = vmul.f32 0.03125, %v890_v45  ;;  %v1097_v45 = vld [vmem:[#allocation9 + $0xb0] sm:$0xff] }
 0x291   :  { %v897_v14 = vadd.f32 1e-05, %v894_v11  ;;  %v1098_v11 = vld [vmem:[#allocation9 + $0xb8] sm:$0xff] }
 0x293   :  { %1957 = vrsqrt.f32 %v897_v14  ;;  %v1099_v14 = vld [vmem:[#allocation9 + $0xc0] sm:$0xff] }
 0x295   :  { %v1956_v15 = vpop.eup %1955 }
 0x296   :  { %v902_v2 = vmul.f32 %v1956_v15, %v881_v49 }
 0x298   :  { %v911_v20 = vmul.f32 %v1611_v16, %v902_v2  ;;  %v1100_v2 = vld [vmem:[#allocation9 + $0xc8] sm:$0xff] }
 0x29a   :  { %v920_v22 = vadd.f32 %v1612_v19, %v911_v20  ;;  %v1888_v20 = vpack.c.bf16 %v1100_v2, %v1099_v14 }
 0x29c   :  { %1750 = vmatmul.mubr.f32.vlgmr.msra.gmra.mrb[0].mxu1 %v920_v22  ;;  %v1101_v22 = vld [vmem:[#allocation9 + $0xd0] sm:$0xff] }
 0x29d   :  { %1752 = vmatprep.mubr.msk.f32.mxu1 %vm2083_vm1, %v2081_v12  ;;  %v1958_v24 = vpop.eup %1957 }
 0x29e   :  { %v903_v25 = vmul.f32 %v1958_v24, %v882_v41  ;;  %v1102_v24 = vld [vmem:[#allocation9 + $0xd8] sm:$0xff] }
 0x2a0   :  { %v912_v30 = vmul.f32 %v1611_v16, %v903_v25  ;;  %v1891_v25 = vpack.c.bf16 %v1102_v24, %v1101_v22 }
 0x2a2   :  { %v921_v63 = vadd.f32 %v1612_v19, %v912_v30  ;;  %v1103_v30 = vld [vmem:[#allocation9 + $0xe0] sm:$0xff] }
 0x2a4   :  { %1753 = vmatmul.mubr.f32.gmra.mrb[2].mxu1 %v921_v63  ;;  %v1104_v63 = vld [vmem:[#allocation9 + $0xe8] sm:$0xff] }
 0x2a5   :  { %1755 = vmatprep.mubr.msk.f32.mxu1 %vm2083_vm1, %v2081_v12  ;;  %v892_v40 = vpop.xlane.xlu1 %891 }
 0x2a6   :  { %v895_v4 = vmul.f32 0.03125, %v892_v40  ;;  %v1894_v40 = vpack.c.bf16 %v1104_v63, %v1103_v30 }
 0x2a8   :  { %v898_v34 = vadd.f32 1e-05, %v895_v4  ;;  %v1105_v4 = vld [vmem:[#allocation9 + $0xf0] sm:$0xff] }
 0x2aa   :  { %1959 = vrsqrt.f32 %v898_v34  ;;  %v1106_v34 = vld [vmem:[#allocation9 + $0xf8] sm:$0xff] }
 0x2b4   :  { %v1960_v36 = vpop.eup %1959 }
 0x2b5   :  { %v904_v38 = vmul.f32 %v1960_v36, %v883_v60  ;;  %v1882_v60 = vpack.c.bf16 %v1096_v59, %v1095_v58  ;;  %v1897_v36 = vpack.c.bf16 %v1106_v34, %v1105_v4  ;;  %v2084_v4 = vmov 0  }
 0x2b6   :  { %1941 = vset.pattern.permute.xlu1 %v2084_v4  ;;  %1942 = vset.pattern.permute.xlu0 %v2084_v4 }
 0x2b7   :  { %v913_v42 = vmul.f32 %v1611_v16, %v904_v38  ;;  %1883 = vmatpush3.bf16.msra.mxu0 %v1882_v60  ;;  %v1885_v16 = vpack.c.bf16 %v1098_v11, %v1097_v45 }
 0x2b8   :  { %1884 = vmatprep.subr.bf16.mxu0 %v2082_v44 }
 0x2b9   :  { %v922_v28 = vadd.f32 %v1612_v19, %v913_v42 }
 0x2bb   :  { %1756 = vmatmul.mubr.f32.gmra.mrb[4].mxu1 %v922_v28  ;;  %1886 = vmatpush3.bf16.msra.mxu0 %v1885_v16 }
 0x2bc   :  { %1803 = vmatprep.mubr.msk.f32.mxu1 %vm2083_vm1, %v2081_v12  ;;  %1887 = vmatprep.subr.bf16.mxu0 %v2082_v44 }
 0x2bf   :  { %1889 = vmatpush3.bf16.msra.mxu0 %v1888_v20 }
 0x2c0   :  { %1890 = vmatprep.subr.bf16.mxu0 %v2082_v44 }
 0x2c3   :  { %1892 = vmatpush3.bf16.msra.mxu0 %v1891_v25 }
 0x2c4   :  { %1893 = vmatprep.subr.bf16.mxu0 %v2082_v44 }
 0x2c7   :  { %1895 = vmatpush3.bf16.msra.mxu0 %v1894_v40  ;;  %v70_v40 = vld [vmem:[#allocation4] sm:$0x1] }
 0x2c8   :  { %1896 = vmatprep.subr.bf16.mxu0 %v2082_v44  ;;  %v72_v34 = vand.u32 2147483647, %v70_v40 }
 0x2cb   :  { %1898 = vmatpush3.bf16.msra.mxu0 %v1897_v36  ;;  %v73_v36 = vsub.f32 0.0, %v72_v34 }
 0x36f   :  { %v1012_v32 = vpop.f32.mrb[0].mxu1 }
 0x370   :  { %v1013_v33 = vadd.f32 %v1613_v21, %v1012_v32  ;;  %v1751_v27 = vpop.f32.mrb[1].mxu1 }
 0x372   :  { %v1026_v46 = vmax.f32 %v1013_v33, 0.0 }
 0x374   :  { %v1033_v35 = vmul.f32 %v2381_v13, %v1026_v46 }
 0x376   :  { %1036 = vadd.xlane.f32.xlu0 %v1033_v35 }
 0x377   :  { %v1017_v26 = vpop.f32.mrb[2].mxu1 }
 0x378   :  { %v1018_v48 = vadd.f32 %v1613_v21, %v1017_v26  ;;  %v1754_v49 = vpop.f32.mrb[3].mxu1  ;;  %v1617_v26 = vld [vmem:[%s2529_s8 + $0x1] ss:$0 sm:$0xff] }
 0x37a   :  { %v1027_v37 = vmax.f32 %v1018_v48, 0.0 }
 0x37c   :  { %v1034_v50 = vmul.f32 %v2381_v13, %v1027_v37 }
 0x37e   :  { %1038 = vadd.xlane.f32.xlu1 %v1034_v50 }
 0x38e   :  { %v1022_v53 = vpop.f32.mrb[4].mxu1 }
 0x38f   :  { %v1023_v39 = vadd.f32 %v1613_v21, %v1022_v53  ;;  %v1757_v41 = vpop.f32.mrb[5].mxu1 }
 0x391   :  { %v1028_v52 = vmax.f32 %v1023_v39, 0.0 }
 0x393   :  { %v1035_v47 = vmul.f32 %v2381_v13, %v1028_v52 }
 0x395   :  { %1040 = vadd.xlane.f32.xlu0 %v1035_v47 }
 0x403   :  { %v1037_v61 = vpop.xlane.xlu0 %1036 }
 0x404   :  { %v1042_v43 = vmul.f32 0.03125, %v1037_v61 }
 0x406   :  { %v1045_v55 = vsub.f32 %v1026_v46, %v1042_v43  ;;  %v1616_v46 = vld [vmem:[%s2528_s7 + $0x1] ss:$0 sm:$0xff] }
 0x408   :  { %v1048_v62 = vmul.f32 %v2381_v13, %v1045_v55 }
 0x40a   :  { %v1051_v0 = vmul.f32 %v1048_v62, %v1048_v62 }
 0x40b   :  { %v1039_v1 = vpop.xlane.xlu1 %1038 }
 0x40c   :  { %1054 = vadd.xlane.f32.xlu1 %v1051_v0  ;;  %v1043_v31 = vmul.f32 0.03125, %v1039_v1 }
 0x40e   :  { %v1046_v6 = vsub.f32 %v1027_v37, %v1043_v31 }
 0x410   :  { %v1049_v8 = vmul.f32 %v2381_v13, %v1046_v6 }
 0x412   :  { %v1052_v29 = vmul.f32 %v1049_v8, %v1049_v8 }
 0x414   :  { %1056 = vadd.xlane.f32.xlu0 %v1052_v29 }
 0x422   :  { %v1041_v23 = vpop.xlane.xlu0 %1040 }
 0x423   :  { %v1044_v9 = vmul.f32 0.03125, %v1041_v23 }
 0x425   :  { %v1047_v10 = vsub.f32 %v1028_v52, %v1044_v9 }
 0x427   :  { %v1050_v15 = vmul.f32 %v2381_v13, %v1047_v10 }
 0x429   :  { %v1053_v19 = vmul.f32 %v1050_v15, %v1050_v15 }
 0x42b   :  { %1058 = vadd.xlane.f32.xlu1 %v1053_v19 }
 0x499   :  { %v1055_v38 = vpop.xlane.xlu1 %1054 }
 0x49a   :  { %v1060_v42 = vmul.f32 0.03125, %v1055_v38  ;;  %v74_v38 = vmul.f32 1.442695, %v73_v36 }
 0x49c   :  { %v1063_v28 = vadd.f32 1e-05, %v1060_v42 }
 0x49e   :  { %1961 = vrsqrt.f32 %v1063_v28 }
 0x4a1   :  { %v1057_v21 = vpop.xlane.xlu0 %1056 }
 0x4a2   :  { %v1061_v32 = vmul.f32 0.03125, %v1057_v21  ;;  %v71_v21 = vmax.f32 %v70_v40, 0.0 }
 0x4a4   :  { %v1064_v33 = vadd.f32 1e-05, %v1061_v32 }
 0x4a6   :  { %1963 = vrsqrt.f32 %v1064_v33 }
 0x4a8   :  { %v1962_v27 = vpop.eup %1961 }
 0x4a9   :  { %v1069_v35 = vmul.f32 %v1962_v27, %v1048_v62 }
 0x4ab   :  { %v1078_v48 = vmul.f32 %v1616_v46, %v1069_v35 }
 0x4ad   :  { %v1087_v49 = vadd.f32 %v1617_v26, %v1078_v48 }
 0x4af   :  { %1791 = vmatmul.mubr.f32.vlgmr.msra.gmra.mrb[6].mxu0 %v1087_v49 }
 0x4b0   :  { %1793 = vmatprep.mubr.msk.f32.mxu0 %vm2083_vm1, %v2081_v12  ;;  %v1964_v37 = vpop.eup %1963 }
 0x4b1   :  { %v1070_v50 = vmul.f32 %v1964_v37, %v1049_v8 }
 0x4b3   :  { %v1079_v53 = vmul.f32 %v1616_v46, %v1070_v50  ;;  %v1622_v50 = vld [vmem:[%s2528_s7 + $0x2] ss:$0 sm:$0xff]  ;;  %s2482_s7 = smov 0  }
 0x4b5   :  { %v1088_v39 = vadd.f32 %v1617_v26, %v1079_v53 }
 0x4b7   :  { %1794 = vmatmul.mubr.f32.gmra.mrb[8].mxu0 %v1088_v39  ;;  %v1623_v39 = vld [vmem:[%s2529_s8 + $0x2] ss:$0 sm:$0xff] }
 0x4b8   :  { %1796 = vmatprep.mubr.msk.f32.mxu0 %vm2083_vm1, %v2081_v12  ;;  %v1059_v41 = vpop.xlane.xlu1 %1058 }
 0x4b9   :  { %v1062_v52 = vmul.f32 0.03125, %v1059_v41 }
 0x4bb   :  { %v1065_v47 = vadd.f32 1e-05, %v1062_v52 }
 0x4bd   :  { %1965 = vrsqrt.f32 %v1065_v47 }
 0x4be   :  { %1967 = vpow2.f32 %v74_v38 }
 0x4c7   :  { %v1966_v5 = vpop.eup %1965 }
 0x4c8   :  { %v1071_v54 = vmul.f32 %v1966_v5, %v1050_v15  ;;  %v1968_v42 = vpop.eup %1967  ;;  %v80_v5 = vld [vmem:[#allocation5] sm:$0x1] }
 0x4c9   :  { %v76_v28 = vadd.f32 1.0, %v1968_v42 }
 0x4ca   :  { %v1080_v56 = vmul.f32 %v1616_v46, %v1071_v54 }
 0x4cb   :  { %1969 = vlog2.f32 %v76_v28 }
 0x4cc   :  { %v1089_v17 = vadd.f32 %v1617_v26, %v1080_v56 }
 0x4ce   :  { %1797 = vmatmul.mubr.f32.gmra.mrb[10].mxu0 %v1089_v17 }
 0x4d5   :  { %v1970_v32 = vpop.eup %1969 }
 0x4d6   :  { %v78_v33 = vmul.f32 0.6931472, %v1970_v32 }
 0x582   :  { %v1181_v57 = vpop.f32.mrb[6].mxu0 }
 0x583   :  { %v1182_v58 = vadd.f32 %v1619_v18, %v1181_v57  ;;  %v1792_v59 = vpop.f32.mrb[7].mxu0 }
 0x585   :  { %v1195_v60 = vmax.f32 %v1182_v58, 0.0 }
 0x587   :  { %v1202_v61 = vmul.f32 %v2381_v13, %v1195_v60 }
 0x589   :  { %1205 = vadd.xlane.f32.xlu0 %v1202_v61 }
 0x58a   :  { %v1186_v43 = vpop.f32.mrb[8].mxu0 }
 0x58b   :  { %v1187_v55 = vadd.f32 %v1619_v18, %v1186_v43  ;;  %v1795_v62 = vpop.f32.mrb[9].mxu0 }
 0x58d   :  { %v1196_v0 = vmax.f32 %v1187_v55, 0.0 }
 0x58f   :  { %v1203_v1 = vmul.f32 %v2381_v13, %v1196_v0 }
 0x591   :  { %1207 = vadd.xlane.f32.xlu1 %v1203_v1 }
 0x5a1   :  { %v1191_v31 = vpop.f32.mrb[10].mxu0 }
 0x5a2   :  { %v1192_v6 = vadd.f32 %v1619_v18, %v1191_v31  ;;  %v1798_v8 = vpop.f32.mrb[11].mxu0  ;;  %v82_v18 = vand.u32 2147483647, %v80_v5  ;;  %v2463_v31 = vsub.s32 0, %v2178_v3 }
 0x5a4   :  { %v1197_v29 = vmax.f32 %v1192_v6, 0.0 }
 0x5a6   :  { %v1204_v23 = vmul.f32 %v2381_v13, %v1197_v29 }
 0x5a8   :  { %1209 = vadd.xlane.f32.xlu0 %v1204_v23 }
 0x616   :  { %v1206_v9 = vpop.xlane.xlu0 %1205 }
 0x617   :  { %v1211_v10 = vmul.f32 0.03125, %v1206_v9 }
 0x619   :  { %v1214_v45 = vsub.f32 %v1195_v60, %v1211_v10  ;;  %v83_v60 = vsub.f32 0.0, %v82_v18 }
 0x61b   :  { %v1217_v11 = vmul.f32 %v2381_v13, %v1214_v45  ;;  %v84_v62 = vmul.f32 1.442695, %v83_v60 }
 0x61d   :  { %v1220_v14 = vmul.f32 %v1217_v11, %v1217_v11 }
 0x61e   :  { %v1208_v15 = vpop.xlane.xlu1 %1207 }
 0x61f   :  { %1223 = vadd.xlane.f32.xlu1 %v1220_v14  ;;  %v1212_v16 = vmul.f32 0.03125, %v1208_v15 }
 0x621   :  { %v1215_v2 = vsub.f32 %v1196_v0, %v1212_v16  ;;  %v81_v16 = vmax.f32 %v80_v5, 0.0 }
 0x623   :  { %v1218_v19 = vmul.f32 %v2381_v13, %v1215_v2 }
 0x625   :  { %v1221_v20 = vmul.f32 %v1218_v19, %v1218_v19 }
 0x627   :  { %1225 = vadd.xlane.f32.xlu0 %v1221_v20 }
 0x635   :  { %v1210_v22 = vpop.xlane.xlu0 %1209 }
 0x636   :  { %v1213_v24 = vmul.f32 0.03125, %v1210_v22 }
 0x638   :  { %v1216_v25 = vsub.f32 %v1197_v29, %v1213_v24  ;;  %v1624_v24 = vsel %vm1348_vm3, 1.0, %v2081_v12 }
 0x63a   :  { %v2450_v30 = vmul.f32 %v2381_v13, %v1216_v25  ;;  %v79_v13 = vadd.f32 %v78_v33, %v71_v21 }
 0x63c   :  { %v1222_v63 = vmul.f32 %v2450_v30, %v2450_v30  ;;  %91 = vst.msk [vmem:[#allocation11] sm:$0x1] %vm90_vm2, %v79_v13  ;;  %v92_v17 = vmul.f32 2.0, %v79_v13 }
 0x63e   :  { %1227 = vadd.xlane.f32.xlu1 %v1222_v63  ;;  %v93_v59 = vmul.f32 %v92_v17, %v79_v13 }
 0x6ac   :  { %v1224_v27 = vpop.xlane.xlu1 %1223 }
 0x6ad   :  { %v1229_v46 = vmul.f32 0.03125, %v1224_v27 }
 0x6af   :  { %v1232_v35 = vadd.f32 1e-05, %v1229_v46 }
 0x6b1   :  { %1971 = vrsqrt.f32 %v1232_v35 }
 0x6b4   :  { %v1226_v26 = vpop.xlane.xlu0 %1225 }
 0x6b5   :  { %v1230_v48 = vmul.f32 0.03125, %v1226_v26 }
 0x6b7   :  { %v1233_v49 = vadd.f32 1e-05, %v1230_v48 }
 0x6b9   :  { %1973 = vrsqrt.f32 %v1233_v49 }
 0x6ba   :  { %1975 = vrcp.f32 %v93_v59 }
 0x6bb   :  { %v1972_v37 = vpop.eup %1971  ;;  %1977 = vpow2.f32 %v84_v62 }
 0x6bc   :  { %v1238_v53 = vmul.f32 %v1972_v37, %v1217_v11 }
 0x6be   :  { %v1247_v41 = vmul.f32 %v1622_v50, %v1238_v53 }
 0x6c0   :  { %v1256_v52 = vadd.f32 %v1623_v39, %v1247_v41 }
 0x6c2   :  { %v1339_v47 = vmul.f32 %v1256_v52, %v1256_v52 }
 0x6c3   :  { %v1974_v54 = vpop.eup %1973 }
 0x6c4   :  { %1342 = vadd.xlane.f32.xlu0 %v1339_v47  ;;  %v1239_v56 = vmul.f32 %v1974_v54, %v1218_v19  ;;  %v1976_v6 = vpop.eup %1975 }
 0x6c5   :  { %v1380_v8 = vrot.slane %v1976_v6, %v2463_v31  ;;  %v1978_v29 = vpop.eup %1977 }
 0x6c6   :  { %v1248_v57 = vmul.f32 %v1622_v50, %v1239_v56  ;;  %v86_v10 = vadd.f32 1.0, %v1978_v29 }
 0x6c8   :  { %v1257_v58 = vadd.f32 %v1623_v39, %v1248_v57 }
 0x6ca   :  { %v1340_v61 = vmul.f32 %v1257_v58, %v1257_v58  ;;  %v1900_v43 = vpack.c.bf16 %v1257_v58, %v1256_v52 }
 0x6cb   :  { %v1228_v55 = vpop.xlane.xlu1 %1227 }
 0x6cc   :  { %1344 = vadd.xlane.f32.xlu1 %v1340_v61  ;;  %1901 = vmatpush3.bf16.xpose.msra.mxu1 %v1900_v43  ;;  %v1231_v0 = vmul.f32 0.03125, %v1228_v55 }
 0x6ce   :  { %v1234_v1 = vadd.f32 1e-05, %v1231_v0 }
 0x6d0   :  { %1979 = vrsqrt.f32 %v1234_v1 }
 0x6d1   :  { %1981 = vlog2.f32 %v86_v10 }
 0x6d3   :  { %1804 = vmatmul.mubr.f32.vlgmr.msra.gmra.mrb[6].mxu1 %v1256_v52 }
 0x6d4   :  { %1806 = vmatprep.mubr.msk.f32.mxu1 %vm2083_vm1, %v2081_v12 }
 0x6d7   :  { %1807 = vmatmul.mubr.f32.gmra.mrb[8].mxu1 %v1257_v58 }
 0x6d8   :  { %1809 = vmatprep.mubr.msk.f32.mxu1 %vm2083_vm1, %v2081_v12 }
 0x6da   :  { %v1980_v23 = vpop.eup %1979 }
 0x6db   :  { %v1240_v9 = vmul.f32 %v1980_v23, %v2450_v30  ;;  %v1982_v15 = vpop.eup %1981  ;;  %v1625_v30 = vsel %vm1349_vm4, 1.0, %v2081_v12 }
 0x6dc   :  { %v88_v2 = vmul.f32 0.6931472, %v1982_v15 }
 0x6dd   :  { %1382 = vperm.xlu1 %1941, %v1380_v8   ;;  %v1249_v45 = vmul.f32 %v1622_v50, %v1240_v9 }
 0x6de   :  { %v89_v19 = vadd.f32 %v88_v2, %v81_v16 }
 0x6df   :  { %v1258_v11 = vadd.f32 %v1623_v39, %v1249_v45 }
 0x6e0   :  { %v1395_v20 = vrot.slane %v89_v19, %v2463_v31 }
 0x6e1   :  { %v1341_v14 = vmul.f32 %v1258_v11, %v1258_v11  ;;  %1810 = vmatmul.mubr.f32.gmra.mrb[10].mxu1 %v1258_v11 }
 0x6e3   :  { %1346 = vadd.xlane.f32.xlu0 %v1341_v14 }
 0x6f9   :  { %1397 = vperm.xlu0 %1942, %v1395_v20  }
 0x751   :  { %v1343_v27 = vpop.xlane.xlu0 %1342 }
 0x759   :  { %v1345_v48 = vpop.xlane.xlu1 %1344 }
 0x75d   :  { %v1383_v57 = vpop.permute.xlu1 %1382 }
 0x770   :  { %v1347_v49 = vpop.xlane.xlu0 %1346 }
 0x778   :  { %v1398_v6 = vpop.permute.xlu0 %1397 }
 0x779   :  { %v1400_v8 = vmul.f32 %v1624_v24, %v1398_v6  ;;  %v1401_v29 = vmul.f32 %v1625_v30, %v1398_v6 }
 0x7a6   :  { %v1325_v22 = vpop.f32.mrb[6].mxu1 }
 0x7a7   :  { %v1805_v25 = vpop.f32.mrb[7].mxu1  ;;  %v1354_v63 = vmul.f32 %v1624_v24, %v1325_v22  ;;  %v1368_v37 = vmul.f32 2.0, %v1325_v22 }
 0x7a9   :  { %v1357_v36 = vsel %vm1356_vm5, %v1354_v63, 0.0 }
 0x7aa   :  { %v1330_v40 = vpop.f32.mrb[8].mxu1 }
 0x7ab   :  { %v1808_v4 = vpop.f32.mrb[9].mxu1  ;;  %v1355_v34 = vmul.f32 %v1625_v30, %v1330_v40  ;;  %v1369_v50 = vmul.f32 2.0, %v1330_v40 }
 0x7ad   :  { %v1358_v38 = vsel %vm1356_vm5, %v1355_v34, 0.0 }
 0x7ae   :  { %v1359_v42 = vadd.f32 %v1358_v38, %v1357_v36 }
 0x7b0   :  { %v1360_v28 = vrot.slane %v1359_v42, 4 }
 0x7b2   :  { %v1361_v21 = vadd.f32 %v1360_v28, %v1359_v42 }
 0x7b4   :  { %v1362_v32 = vrot.slane %v1361_v21, 2  ;;  %v1335_v33 = vpop.f32.mrb[10].mxu1 }
 0x7b5   :  { %v1811_v46 = vpop.f32.mrb[11].mxu1  ;;  %v1405_v53 = vmul.f32 2.0, %v1335_v33 }
 0x7b6   :  { %v1363_v13 = vadd.f32 %v1362_v32, %v1361_v21 }
 0x7b8   :  { %v1364_v35 = vrot.slane %v1363_v13, 1 }
 0x7ba   :  { %v1365_v26 = vadd.f32 %v1364_v35, %v1363_v13 }
 0x7bc   :  { %v1366_v39 = vadd.f32 %v1365_v26, %v1343_v27  ;;  %v1367_v41 = vadd.f32 %v1365_v26, %v1345_v48  ;;  %v1404_v52 = vadd.f32 %v1365_v26, %v1347_v49 }
 0x7be   :  { %v1370_v47 = vsub.f32 %v1366_v39, %v1368_v37  ;;  %v1371_v5 = vsub.f32 %v1367_v41, %v1369_v50  ;;  %v1406_v54 = vsub.f32 %v1404_v52, %v1405_v53 }
 0x7c0   :  { %v1372_v56 = vmax.f32 %v1370_v47, 0.0  ;;  %v1373_v17 = vmax.f32 %v1371_v5, 0.0  ;;  %v1407_v18 = vmax.f32 %v1406_v54, 0.0 }
 0x7c2   :  { %v1374_v58 = vsub.f32 0.0, %v1372_v56  ;;  %v1375_v59 = vsub.f32 0.0, %v1373_v17  ;;  %v1408_v60 = vsub.f32 0.0, %v1407_v18 }
 0x7c4   :  { %v1385_v61 = vmul.f32 %v1383_v57, %v1374_v58  ;;  %v1386_v43 = vmul.f32 %v1383_v57, %v1375_v59  ;;  %v1409_v55 = vmul.f32 %v1408_v60, %v1383_v57 }
 0x7c6   :  { %v1387_v62 = vmul.f32 1.442695, %v1385_v61  ;;  %v1389_v0 = vmul.f32 1.442695, %v1386_v43  ;;  %v1410_v1 = vmul.f32 1.442695, %v1409_v55 }
 0x7c8   :  { %1983 = vpow2.f32 %v1387_v62 }
 0x7c9   :  { %1985 = vpow2.f32 %v1389_v0 }
 0x7ca   :  { %1987 = vpow2.f32 %v1410_v1 }
 0x7d2   :  { %v1984_v23 = vpop.eup %1983 }
 0x7d3   :  { %v1986_v9 = vpop.eup %1985  ;;  %v1402_v10 = vadd.f32 %v1984_v23, %v1400_v8 }
 0x7d4   :  { %v2478_v45 = vpop.eup %1987  ;;  %v1403_v11 = vadd.f32 %v1986_v9, %v1401_v29 }
 0x7d5   :  { %1412 = vst.msk [vmem:[#allocation2] sm:$0xff] %vm1356_vm5, %v1402_v10 }
 0x7d6   :  { %1413 = vst.msk [vmem:[#allocation2 + $0x8] sm:$0xff] %vm1356_vm5, %v1403_v11 }
 0x7d7 LB: > { %v1428_v14 = vstv %s2069_s7  ;;  %s1424_s8 = scalar_lea.vmem [#allocation2], %s2069_s7  ;;  %v2085_v19 = vmov 0.0   ;;  %vm1433_vm7 = vcmask 122880   ;;  %s1426_s24 = scalar_lea.vmem [#allocation3], %s2069_s7  ;;  %v1470_v26 = vld [vmem:[#allocation3 + $0x8] sm:$0xff]  ;;  %v1469_v48 = vld [vmem:[#allocation3] sm:$0xff]  ;;  %s2069_s7 = sphi %s2482_s7, %s1423_s7  }
 0x7d8   : > { %vm1429_vm6 = vcmp.eq.s32.totalorder %v2374_v51, %v1428_v14  ;;  %vm1452_vm8 = vcmp.eq.s32.totalorder %v2187_v7, %v1428_v14  ;;  %vm1451_vm9 = vcmp.eq.s32.totalorder %v2178_v3, %v1428_v14  ;;  %v1427_v42 = vld [vmem:[%s1426_s24] sm:$0x1]  ;;  %s1423_s7 = sadd.s32 1, %s2069_s7  }
 0x7d9   : > { %v1626_v20 = vsel %vm1429_vm6, 1.0, %v2085_v19  ;;  %v1628_v4 = vsel %vm1452_vm8, 1.0, %v2085_v19  ;;  %v1627_v34 = vsel %vm1451_vm9, 1.0, %v2085_v19  ;;  %p1420_p2 = scmp.ge.s32.totalorder %s1423_s7, 16  }
 0x7da   :  { %1902 = vmatprep.subr.bf16.mxu1 (%p1420_p2), %v2082_v44  ;;  %1816 = vmatprep.mubr.msk.f32.mxu1 (%p1420_p2), %vm2083_vm1, %v2081_v12  ;;  %s2086_s3 = smov (%p1420_p2), [#allocation11]  }
 0x7db   :  { %s1565_s22 = sshll.u32 (%p1420_p2), %s2086_s3, 4  ;;  %s1566_s22 = int_to_ptr.vmem [resolvable:$true] %s1565_s22 }
 0x7dc   : > { %v1441_v16 = vld [vmem:[#allocation2] sm:$0xff]  ;;  %s2035_s25 = scalar_lea.vmem (%p1420_p2), %s1566_s22, 16  ;;  %s2039_s26 = scalar_lea.vmem (%p1420_p2), %s1566_s22, 32 }
 0x7dd   : > { %v1442_v15 = vld [vmem:[#allocation2 + $0x8] sm:$0xff]  ;;  %v1425_v2 = vld [vmem:[%s1424_s8] sm:$0x1]  ;;  %v1443_v25 = vmul.f32 %v1626_v20, %v1441_v16  ;;  %p2036_p3 = scmp.ne.s32.totalorder (%p1420_p2), %s1566_s22, %s2035_s25  ;;  %p2040_p4 = scmp.lt.s32.totalorder (%p1420_p2), %s1566_s22, %s1566_s22 }
 0x7de   : > { %v1432_v22 = vmul.f32 %v1626_v20, %v1425_v2  ;;  %v1444_v24 = vmul.f32 %v1626_v20, %v1442_v15  ;;  %p2041_p5 = scmp.lt.s32.totalorder (%p1420_p2), %s2039_s26, %s2035_s25 }
 0x7df   : > { %v1445_v40 = vsel %vm1356_vm5, %v1443_v25, 0.0 }
 0x7e0   : > { %v1434_v30 = vsel %vm1433_vm7, %v1432_v22, 0.0  ;;  %v1448_v63 = vsel %vm1356_vm5, %v1444_v24, 0.0  ;;  %p2042_p6 = por (%p1420_p2), %p2041_p5, %p2040_p4 }
 0x7e1   : > { %1435 = vadd.xlane.f32.xlu0 %v1434_v30  ;;  %1449 = vadd.xlane.f32.xlu1 %v1448_v63 }
 0x7e2   :  { %p2043_p7 = pnand (%p1420_p2), %p2042_p6, %p2036_p3 }
 0x7e5   : > { %1446 = vadd.xlane.f32.xlu0 %v1445_v40 }
 0x86e   : > { %v1436_v36 = vpop.xlane.xlu0 %1435  ;;  %v1450_v38 = vpop.xlane.xlu1 %1449 }
 0x86f   : > { %1989 = vrcp.f32 %v1436_v36  ;;  %v1458_v13 = vsub.f32 %v1450_v38, %v1628_v4 }
 0x872   : > { %v1447_v28 = vpop.xlane.xlu0 %1446 }
 0x873   : > { %v1457_v27 = vsub.f32 %v1447_v28, %v1627_v34 }
 0x879   : > { %v1990_v21 = vpop.eup %1989 }
 0x87a   : > { %v1439_v32 = vmul.f32 %v1990_v21, %v1425_v2  ;;  %v1440_v33 = vmul.f32 %v1990_v21, %v1427_v42 }
 0x87c   : > { %v1462_v46 = vrot.slane %v1439_v32, %v2463_v31  ;;  %v1474_v35 = vrot.slane %v1440_v33, %v2463_v31 }
 0x87d   :  { %1422 = sbr.rel (!%p1420_p2) target bundleno = 2007 (0x7d7), region = 91 }
 0x87e   : > { %v1464_v49 = vmul.f32 %v1462_v46, %v1458_v13  ;;  %v1476_v37 = vmul.f32 %v1474_v35, %v1458_v13  ;;  %v1463_v50 = vmul.f32 %v1462_v46, %v1457_v27  ;;  %v1475_v53 = vmul.f32 %v1474_v35, %v1457_v27 }
 0x880   : > { %v1466_v39 = vsub.f32 %v1442_v15, %v1464_v49  ;;  %v1478_v41 = vsub.f32 %v1470_v26, %v1476_v37  ;;  %v1465_v52 = vsub.f32 %v1441_v16, %v1463_v50  ;;  %v1477_v47 = vsub.f32 %v1469_v48, %v1475_v53 }
 0x882   : > { %1468 = vst.msk [vmem:[#allocation2 + $0x8] sm:$0xff] %vm1356_vm5, %v1466_v39  ;;  %1480 = vst [vmem:[#allocation3 + $0x8] sm:$0xff] %v1478_v41 }
 0x883   : > { %1467 = vst.msk [vmem:[#allocation2] sm:$0xff] %vm1356_vm5, %v1465_v52  ;;  %1479 = vst [vmem:[#allocation3] sm:$0xff] %v1477_v47 }
 0x889   :  { %v1482_v54 = vld [vmem:[#allocation3 + $0x8] sm:$0xff] }
 0x88a   :  { %v1481_v5 = vld [vmem:[#allocation3] sm:$0xff] }
 0x88b   :  { %v1903_v56 = vpack.c.bf16 %v1482_v54, %v1481_v5 }
 0x88d   :  { %1904 = vmatpush3.bf16.msra.mxu1 %v1903_v56 }
 0x890   :  { %1817 = vmatmul.mubr.msk.f32.vlgmr.msra.gmra.mrb[12].mxu1 %vm1356_vm5, %v2478_v45 }
 0x891   :  { %2046 = shalt.err (!%p2043_p7)
}
 0x892   :  { %s2047_s5 = scalar_lea.hbm %s2532_s11, 16 }
 0x893   :  { %p2048_p8 = scmp.ne.s32.totalorder %s2532_s11, %s2047_s5  ;;  %p2051_p9 = scmp.lt.u32.totalorder %s2047_s5, %s2532_s11 }
 0x895   :  { %p2053_p10 = pnand %p2051_p9, %p2048_p8 }
 0x897   :  { %2056 = shalt.err (!%p2053_p10)
}
 0x898   :  { %1568 = dma.vmem_to_hbm [thread:$0]  %s1566_s22, 16, %s2532_s11, [#allocation8]  }
 0x963   :  { %v1552_v3 = vpop.f32.mrb[12].mxu1 }
 0x964   :  { %1556 = vst [vmem:[%s2531_s10] sm:$0xff] %v1552_v3  ;;  %v1818_v7 = vpop.f32.mrb[13].mxu1 }
 0x965   :  { %2065 = dma.done.wait [#allocation8], 16  }
 0x966   :  { %2066 = vsyncadd [#allocation8], 4294967280 }
 0x967   :  { %1574 = vsyncpa [#allocation7], 1 }
 0x968   :  { %1575 = vsyncpa [#allocation10], 1 }
 0x969   :  { %1576 = vsyncpa [#allocation8], 1 }

</bundles_post_ra>
